<compile_context>
chip_gen: v7x
topology: tpu7x:2x2x1
jax: 0.10.0
libtpu: 0.0.40
codegen_flags: <defaults>
</compile_context>

<pallas_src>
import functools
import math

import jax
import jax.numpy as jnp
from jax import lax
from jax.experimental import pallas as pl
from jax.experimental.pallas import tpu as pltpu


LANE = 128      # out-channel padding -> lane-dense output stores
SUB = 16        # bf16 sublane packing: contraction (channel) dim padded to this
DEF_TR = 256    # default output-row tile (flattened n*h*w rows at padded width)
BIN_TO = 128    # binarize kernel: weight rows per grid step


def _round_up(x, m):
    return ((x + m - 1) // m) * m


# ----------------------------------------------------------------------------
# Pallas kernel 1: Signum-binarize the weight + alpha = mean(|w|) per out-chan.
#   w_ref:     [to, K] f32 (zero rows for the O->O_pad padding)
#   wb_ref:    [to, K] bf16 binarized weights (Signum = chain of AffineReLUs)
#   alpha_ref: [to, 1] f32
# NOTE: the AffineReLU chain (like the PyTorch module) maps the tiny band
# 0 < (w - mean) <= ~1e-3 to -1 rather than +1; this matches the reference.
# ----------------------------------------------------------------------------
def _binarize_alpha_kernel(w_ref, wb_ref, alpha_ref):
    w = w_ref[...]
    mean = jnp.mean(w, axis=1, keepdims=True)            # Mean() over (C,kH,kW)
    v = w - mean
    v = jnp.maximum(v - 1e-6, 0.0)                        # AffineReLU(m=1,     c=-(0+1e-6))
    v = jnp.maximum(-1000.0 * v + 1.0, 0.0)               # AffineReLU(m=-1000, c=1)
    v = jnp.maximum(-1000.0 * v + 1.0, 0.0)               # AffineReLU(m=-1000, c=1)
    wb_ref[...] = (2.0 * (v - 0.5)).astype(wb_ref.dtype)  # -> {-1,+1}, exact in bf16
    alpha_ref[...] = jnp.mean(jnp.abs(w), axis=1, keepdims=True)


def binarize_and_alpha(w2d_pad, *, to=BIN_TO):
    O_pad, K = w2d_pad.shape
    return pl.pallas_call(
        _binarize_alpha_kernel,
        out_shape=(jax.ShapeDtypeStruct((O_pad, K), jnp.bfloat16),
                   jax.ShapeDtypeStruct((O_pad, 1), jnp.float32)),
        grid_spec=pltpu.PrefetchScalarGridSpec(
            num_scalar_prefetch=0,
            grid=(O_pad // to,),
            in_specs=[pl.BlockSpec((to, K), lambda i: (i, 0))],
            out_specs=(pl.BlockSpec((to, K), lambda i: (i, 0)),
                       pl.BlockSpec((to, 1), lambda i: (i, 0))),
        ),
        compiler_params=pltpu.CompilerParams(
            dimension_semantics=("parallel",)),
    )(w2d_pad)


# ----------------------------------------------------------------------------
# Pallas kernel 2: fused, im2col-free binary conv + alpha + beta + ReLU.
#   x0_ref:    [tr, C_pad]            bf16 row tile of the flattened padded NHWC input
#   xh_ref:    [tb, C_pad]            bf16 halo rows (next rows of the same array)
#   w_ref:     [nsh, C_pad, O_pad]    bf16 binarized weights (VMEM-resident)
#   alpha_ref: [1, O_pad]             f32  per-out-channel scale (VMEM-resident)
#   beta_ref:  [tr, 1]                f32  per-output-row scale
#   o_ref:     [tr, O_pad]            bf16 (lane-dense, unmasked stores)
#   xw_ref:    [tr + halo_pad, C_pad] bf16 VMEM scratch (contiguous window)
#   acc_ref:   [tr, O_pad]            f32  VMEM accumulator
# ----------------------------------------------------------------------------
def _fused_conv_kernel(x0_ref, xh_ref, w_ref, alpha_ref, beta_ref, o_ref,
                       xw_ref, acc_ref, *, shifts, tr, halo_pad):
    # Assemble the contiguous activation window (row tile + halo) in VMEM.
    xw_ref[pl.ds(0, tr), :] = x0_ref[...]
    xw_ref[pl.ds(tr, halo_pad), :] = xh_ref[pl.ds(0, halo_pad), :]

    # One small matmul per kernel tap (static row shift), f32 accumulation.
    for s, shift in enumerate(shifts):
        xs = xw_ref[pl.ds(shift, tr), :]
        contrib = lax.dot_general(
            xs, w_ref[s],
            dimension_numbers=(((1,), (0,)), ((), ())),
            preferred_element_type=jnp.float32)
        if s == 0:
            acc_ref[...] = contrib
        else:
            acc_ref[...] += contrib

    out = acc_ref[...] * alpha_ref[...] * beta_ref[...]
    o_ref[...] = jnp.maximum(out, 0.0).astype(o_ref.dtype)


def fused_binary_conv(xflat, wk, alpha_row, beta_col, *, shifts, tr, tb, halo_pad):
    R_x, C_pad = xflat.shape
    nsh, _, O_pad = wk.shape
    R_out = beta_col.shape[0]
    n_tiles = R_out // tr
    hstep = tr // tb

    kernel = functools.partial(_fused_conv_kernel,
                               shifts=shifts, tr=tr, halo_pad=halo_pad)

    # VMEM footprint: double-buffered pipelined operands + scratch, with slack.
    est = (2 * (tr * C_pad * 2 + tb * C_pad * 2 + nsh * C_pad * O_pad * 2
                + O_pad * 4 + tr * 4)
           + 2 * tr * O_pad * 2
           + (tr + halo_pad) * C_pad * 2
           + tr * O_pad * 4)
    vmem_limit = int(min(48 * 1024 * 1024,
                         max(32 * 1024 * 1024, 1.5 * est + (8 << 20))))
    # TODO(synk): for very large C*O (weights >~ 20 MiB) add an O-tile grid axis
    # instead of keeping the full [nsh, C_pad, O_pad] weight resident.

    flops = 2 * R_out * O_pad * C_pad * nsh
    bytes_accessed = (R_x * C_pad * 2 + n_tiles * tb * C_pad * 2
                      + nsh * C_pad * O_pad * 2
                      + R_out * 4 + R_out * O_pad * 2)

    return pl.pallas_call(
        kernel,
        out_shape=jax.ShapeDtypeStruct((R_out, O_pad), jnp.bfloat16),
        grid_spec=pltpu.PrefetchScalarGridSpec(
            num_scalar_prefetch=0,
            grid=(n_tiles,),
            in_specs=[
                pl.BlockSpec((tr, C_pad), lambda i: (i, 0)),                   # row tile
                pl.BlockSpec((tb, C_pad), lambda i: ((i + 1) * hstep, 0)),     # halo rows
                pl.BlockSpec((nsh, C_pad, O_pad), lambda i: (0, 0, 0)),        # weights (resident)
                pl.BlockSpec((1, O_pad), lambda i: (0, 0)),                    # alpha (resident)
                pl.BlockSpec((tr, 1), lambda i: (i, 0)),                       # beta
            ],
            out_specs=pl.BlockSpec((tr, O_pad), lambda i: (i, 0)),
            scratch_shapes=[
                pltpu.VMEM((tr + halo_pad, C_pad), jnp.bfloat16),
                pltpu.VMEM((tr, O_pad), jnp.float32),
            ],
        ),
        compiler_params=pltpu.CompilerParams(
            dimension_semantics=("parallel",),
            vmem_limit_bytes=vmem_limit,
        ),
        cost_estimate=pl.CostEstimate(
            flops=int(flops), transcendentals=0,
            bytes_accessed=int(bytes_accessed)),
    )(xflat, xflat, wk, alpha_row, beta_col)


# ----------------------------------------------------------------------------
# Forward pass of MultiplicationWithXNOR (Conv2d path, training-mode BatchNorm,
# dropout=0). x:[N,C,H,W], w:[O,C,kH,kW], b:[O] (ignored: conv bias is zeroed).
# ----------------------------------------------------------------------------
def multiplication_with_xnor_forward(x, w, b, *, stride, padding):
    N, C, H, W = x.shape
    O, _, kH, kW = w.shape
    s, p = stride, padding

    # --- BatchNorm2d (training mode: biased batch stats, gamma=1, beta=0, eps=1e-4).
    #     Two-pass variance (clamped) per review correctness concern. ---
    mu = jnp.mean(x, axis=(0, 2, 3), keepdims=True)
    var = jnp.mean(jnp.square(x - mu), axis=(0, 2, 3), keepdims=True)
    xn = (x - mu) * lax.rsqrt(jnp.maximum(var, 0.0) + 1e-4)
    # TODO(synk): BatchNorm running-stats update is stateful training bookkeeping, not modeled.

    # --- BetaVector: mean over channel dim of |bn(x)| -> [N, H, W] (f32) ---
    beta = jnp.mean(jnp.abs(xn), axis=1)

    # --- geometry ---
    Hp, Wp = H + 2 * p, W + 2 * p
    H_out = (H + 2 * p - kH) // s + 1
    W_out = (W + 2 * p - kW) // s + 1
    K = C * kH * kW
    nsh = kH * kW
    O_pad = _round_up(O, LANE)
    C_pad = _round_up(C, SUB)

    # --- Signum(w) + AlphaVector(w) in a Pallas kernel; then reshape the binarized
    #     weights to [kH*kW, C_pad, O_pad] (one-time, tiny) so the hot kernel
    #     contracts ((1,),(0,)) with no per-step transpose. Padded O rows get
    #     alpha=0 -> their output columns are zeroed (and cropped anyway). ---
    w2d = jnp.pad(w.reshape(O, K).astype(jnp.float32), ((0, O_pad - O), (0, 0)))
    wb2d, alpha = binarize_and_alpha(w2d)                  # [O_pad, K] bf16, [O_pad, 1] f32
    alpha_row = alpha.reshape(1, O_pad)
    wk = wb2d.reshape(O_pad, C, kH, kW).transpose(2, 3, 1, 0).reshape(nsh, C, O_pad)
    wk = jnp.pad(wk, ((0, 0), (0, C_pad - C), (0, 0)))     # zero-padded channels

    # --- activations: NHWC, spatially + channel padded, flattened to rows ---
    xpad = jnp.pad(xn.astype(jnp.bfloat16).transpose(0, 2, 3, 1),
                   ((0, 0), (p, p), (p, p), (0, C_pad - C)))
    R_val = N * Hp * Wp
    xflat = xpad.reshape(R_val, C_pad)

    # --- row tiling: the conv is computed at padded ("full") width so every
    #     kernel tap is a pure row shift; valid outputs are cropped afterwards. ---
    halo = (kH - 1) * Wp + (kW - 1)
    halo_pad = max(SUB, _round_up(halo, SUB))
    tr = 512 if R_val >= 8192 else DEF_TR                  # bigger tiles on big images
    tr = max(tr, halo_pad)
    n_tiles = (R_val + tr - 1) // tr
    R_out = n_tiles * tr
    tb = tr                                                # halo block height (divides tr)
    cand = SUB
    while cand < tr:
        if cand >= halo_pad and tr % cand == 0:
            tb = cand
            break
        cand *= 2
    xflat = jnp.pad(xflat, ((0, R_out + tb - R_val), (0, 0)))

    # --- ExpandAndMultiply(conv_out, beta3d): center-crop beta to the output size
    #     and scatter it onto the full-width row grid so the epilogue stays fused. ---
    sh1 = (H - H_out) // 2                                 # integer shift (original intends int div)
    sh2 = (W - W_out) // 2
    beta_c = beta[:, sh1:sh1 + H_out, sh2:sh2 + W_out]     # [N, H_out, W_out]
    beta_full = jnp.zeros((N, Hp, Wp), jnp.float32)
    beta_full = beta_full.at[:, 0:(H_out - 1) * s + 1:s,
                             0:(W_out - 1) * s + 1:s].set(beta_c)
    beta_col = jnp.pad(beta_full.reshape(R_val, 1), ((0, R_out - R_val), (0, 0)))

    shifts = tuple(kh * Wp + kw for kh in range(kH) for kw in range(kW))
    # TODO(synk): for stride > 1 the full-width formulation wastes ~stride^2 MXU work
    # (only every stride-th row/col is kept); a strided-window variant would avoid it.

    out_full = fused_binary_conv(xflat, wk, alpha_row, beta_col,
                                 shifts=shifts, tr=tr, tb=tb, halo_pad=halo_pad)

    # --- crop valid rows / channels, back to NCHW f32 (module output layout) ---
    out = out_full[:R_val].reshape(N, Hp, Wp, O_pad)
    out = out[:, 0:(H_out - 1) * s + 1:s, 0:(W_out - 1) * s + 1:s, :O]
    return out.transpose(0, 3, 1, 2).astype(jnp.float32)


# ----------------------------------------------------------------------------
# Pure-JAX f32 reference (no Pallas) for a correctness check.
# ----------------------------------------------------------------------------
def reference_forward(x, w, b, *, stride, padding):
    mu = jnp.mean(x, axis=(0, 2, 3), keepdims=True)
    var = jnp.mean((x - mu) ** 2, axis=(0, 2, 3), keepdims=True)
    xn = (x - mu) / jnp.sqrt(var + 1e-4)
    beta = jnp.mean(jnp.abs(xn), axis=1)
    wmean = jnp.mean(w, axis=(1, 2, 3), keepdims=True)
    v = w - wmean
    v = jnp.maximum(v - 1e-6, 0.0)
    v = jnp.maximum(-1000.0 * v + 1.0, 0.0)
    v = jnp.maximum(-1000.0 * v + 1.0, 0.0)
    wb = 2.0 * (v - 0.5)
    alpha = jnp.mean(jnp.abs(w), axis=(1, 2, 3))
    y = lax.conv_general_dilated(
        xn, wb, window_strides=(stride, stride),
        padding=[(padding, padding), (padding, padding)],
        dimension_numbers=('NCHW', 'OIHW', 'NCHW'))
    y = y * alpha[None, :, None, None]
    N, _, H_out, W_out = y.shape
    H, Wd = x.shape[2], x.shape[3]
    sh1 = (H - H_out) // 2
    sh2 = (Wd - W_out) // 2
    beta_c = beta[:, sh1:sh1 + H_out, sh2:sh2 + W_out]
    y = y * beta_c[:, None, :, :]
    return jnp.maximum(y, 0.0)


if __name__ == "__main__":
    key = jax.random.PRNGKey(0)
    k1, k2 = jax.random.split(key)

    # Small shapes consistent with the module: conv path, "same" conv.
    N, C, H, W = 2, 4, 16, 16
    O, kH, kW = 8, 3, 3
    stride, padding = 1, 1

    x = jax.random.normal(k1, (N, C, H, W), dtype=jnp.float32)
    # Deterministic weight mimicking Conv2d init: normal(0, sqrt(2 / (kH*kW*O)))
    n_fan = kH * kW * O
    w = jax.random.normal(k2, (O, C, kH, kW), dtype=jnp.float32) * math.sqrt(2.0 / n_fan)
    b = jnp.zeros((O,), dtype=jnp.float32)   # forward zeroes the conv bias anyway

    fwd = jax.jit(multiplication_with_xnor_forward, static_argnames=("stride", "padding"))
    out = fwd(x, w, b, stride=stride, padding=padding)
    out = jax.block_until_ready(out)

    ref = reference_forward(x, w, b, stride=stride, padding=padding)
    assert out.shape == (N, O, H, W), out.shape
    # Tolerance accounts for bf16 activations/weights/output (f32 MXU accumulate).
    max_err = float(jnp.max(jnp.abs(out - ref)))
    assert max_err < 5e-2, f"max abs err {max_err}"

    print("KERNEL_OK")
</pallas_src>

<mosaic_0001>
module attributes {stable_mosaic.version = 11 : i64} {
  func.func @_binarize_alpha_kernel(%arg0: i32, %arg1: memref<128x36xf32, #tpu.memory_space<vmem>>, %arg2: memref<128x36xbf16, #tpu.memory_space<vmem>>, %arg3: memref<128x1xf32, #tpu.memory_space<vmem>>) attributes {dimension_semantics = [#tpu.dimension_semantics<parallel>], iteration_bounds = array<i64: 1>, scalar_prefetch = 0 : i64, scratch_operands = 0 : i64, tpu.core_type = #tpu.core_type<tc>, window_params = [{transform_indices = @transform_0, window_bounds = array<i64: 128, 36>}, {transform_indices = @transform_1, window_bounds = array<i64: 128, 36>}, {transform_indices = @transform_2, window_bounds = array<i64: 128, 1>}]} {
    %c0 = arith.constant 0 : index
    %c0_0 = arith.constant 0 : index
    %0 = vector.load %arg1[%c0, %c0_0] : memref<128x36xf32, #tpu.memory_space<vmem>>, vector<128x36xf32>
    %cst = arith.constant dense<0.000000e+00> : vector<128xf32>
    %1 = vector.multi_reduction <add>, %0, %cst [1] : vector<128x36xf32> to vector<128xf32>
    %2 = vector.shape_cast %1 : vector<128xf32> to vector<128x1xf32>
    %cst_1 = arith.constant 3.600000e+01 : f32
    %3 = vector.broadcast %cst_1 : f32 to vector<128x1xf32>
    %4 = arith.divf %2, %3 : vector<128x1xf32>
    %5 = vector.broadcast %4 : vector<128x1xf32> to vector<128x36xf32>
    %6 = arith.subf %0, %5 : vector<128x36xf32>
    %cst_2 = arith.constant 9.99999997E-7 : f32
    %7 = vector.broadcast %cst_2 : f32 to vector<128x36xf32>
    %8 = arith.subf %6, %7 : vector<128x36xf32>
    %cst_3 = arith.constant 0.000000e+00 : f32
    %9 = vector.broadcast %cst_3 : f32 to vector<128x36xf32>
    %10 = arith.maximumf %8, %9 : vector<128x36xf32>
    %cst_4 = arith.constant -1.000000e+03 : f32
    %11 = vector.broadcast %cst_4 : f32 to vector<128x36xf32>
    %12 = arith.mulf %11, %10 : vector<128x36xf32>
    %cst_5 = arith.constant 1.000000e+00 : f32
    %13 = vector.broadcast %cst_5 : f32 to vector<128x36xf32>
    %14 = arith.addf %12, %13 : vector<128x36xf32>
    %cst_6 = arith.constant 0.000000e+00 : f32
    %15 = vector.broadcast %cst_6 : f32 to vector<128x36xf32>
    %16 = arith.maximumf %14, %15 : vector<128x36xf32>
    %cst_7 = arith.constant -1.000000e+03 : f32
    %17 = vector.broadcast %cst_7 : f32 to vector<128x36xf32>
    %18 = arith.mulf %17, %16 : vector<128x36xf32>
    %cst_8 = arith.constant 1.000000e+00 : f32
    %19 = vector.broadcast %cst_8 : f32 to vector<128x36xf32>
    %20 = arith.addf %18, %19 : vector<128x36xf32>
    %cst_9 = arith.constant 0.000000e+00 : f32
    %21 = vector.broadcast %cst_9 : f32 to vector<128x36xf32>
    %22 = arith.maximumf %20, %21 : vector<128x36xf32>
    %cst_10 = arith.constant 5.000000e-01 : f32
    %23 = vector.broadcast %cst_10 : f32 to vector<128x36xf32>
    %24 = arith.subf %22, %23 : vector<128x36xf32>
    %cst_11 = arith.constant 2.000000e+00 : f32
    %25 = vector.broadcast %cst_11 : f32 to vector<128x36xf32>
    %26 = arith.mulf %25, %24 : vector<128x36xf32>
    %27 = arith.truncf %26 : vector<128x36xf32> to vector<128x36xbf16>
    %c0_12 = arith.constant 0 : index
    %c0_13 = arith.constant 0 : index
    %28 = vector.load %arg2[%c0_12, %c0_13] : memref<128x36xbf16, #tpu.memory_space<vmem>>, vector<128x36xbf16>
    tpu.vector_store %arg2[%c0_12, %c0_13], %27 {strides = array<i32>} : memref<128x36xbf16, #tpu.memory_space<vmem>>, vector<128x36xbf16>,
    %29 = math.absf %0 : vector<128x36xf32>
    %cst_14 = arith.constant dense<0.000000e+00> : vector<128xf32>
    %30 = vector.multi_reduction <add>, %29, %cst_14 [1] : vector<128x36xf32> to vector<128xf32>
    %31 = vector.shape_cast %30 : vector<128xf32> to vector<128x1xf32>
    %cst_15 = arith.constant 3.600000e+01 : f32
    %32 = vector.broadcast %cst_15 : f32 to vector<128x1xf32>
    %33 = arith.divf %31, %32 : vector<128x1xf32>
    %c0_16 = arith.constant 0 : index
    %c0_17 = arith.constant 0 : index
    %34 = vector.load %arg3[%c0_16, %c0_17] : memref<128x1xf32, #tpu.memory_space<vmem>>, vector<128x1xf32>
    tpu.vector_store %arg3[%c0_16, %c0_17], %33 {strides = array<i32>} : memref<128x1xf32, #tpu.memory_space<vmem>>, vector<128x1xf32>,
    return
  }
  func.func @transform_0(%arg0: i32) -> (i32, i32) {
    %c0_i32 = arith.constant 0 : i32
    %c0_i32_0 = arith.constant 0 : i32
    return %arg0, %c0_i32 : i32, i32
  }
  func.func @transform_1(%arg0: i32) -> (i32, i32) {
    %c0_i32 = arith.constant 0 : i32
    %c0_i32_0 = arith.constant 0 : i32
    return %arg0, %c0_i32 : i32, i32
  }
  func.func @transform_2(%arg0: i32) -> (i32, i32) {
    %c0_i32 = arith.constant 0 : i32
    %c0_i32_0 = arith.constant 0 : i32
    return %arg0, %c0_i32 : i32, i32
  }
}

module attributes {stable_mosaic.version = 11 : i64} {
  func.func @_fused_conv_kernel(%arg0: i32, %arg1: memref<256x16xbf16, #tpu.memory_space<vmem>>, %arg2: memref<64x16xbf16, #tpu.memory_space<vmem>>, %arg3: memref<9x16x128xbf16, #tpu.memory_space<vmem>>, %arg4: memref<1x128xf32, #tpu.memory_space<vmem>>, %arg5: memref<256x1xf32, #tpu.memory_space<vmem>>, %arg6: memref<256x128xbf16, #tpu.memory_space<vmem>>, %arg7: memref<304x16xbf16, #tpu.memory_space<vmem>>, %arg8: memref<256x128xf32, #tpu.memory_space<vmem>>) attributes {dimension_semantics = [#tpu.dimension_semantics<parallel>], iteration_bounds = array<i64: 3>, scalar_prefetch = 0 : i64, scratch_operands = 2 : i64, tpu.core_type = #tpu.core_type<tc>, window_params = [{transform_indices = @transform_0, window_bounds = array<i64: 256, 16>}, {transform_indices = @transform_1, window_bounds = array<i64: 64, 16>}, {pipeline_mode = #tpu.pipeline_mode<synchronous>, transform_indices = @transform_2, window_bounds = array<i64: 9, 16, 128>}, {pipeline_mode = #tpu.pipeline_mode<synchronous>, transform_indices = @transform_3, window_bounds = array<i64: 1, 128>}, {transform_indices = @transform_4, window_bounds = array<i64: 256, 1>}, {transform_indices = @transform_5, window_bounds = array<i64: 256, 128>}]} {
    %c0 = arith.constant 0 : index
    %c0_0 = arith.constant 0 : index
    %0 = vector.load %arg1[%c0, %c0_0] : memref<256x16xbf16, #tpu.memory_space<vmem>>, vector<256x16xbf16>
    %c0_1 = arith.constant 0 : index
    %c0_2 = arith.constant 0 : index
    %1 = vector.load %arg7[%c0_1, %c0_2] : memref<304x16xbf16, #tpu.memory_space<vmem>>, vector<256x16xbf16>
    tpu.vector_store %arg7[%c0_1, %c0_2], %0 {strides = array<i32>} : memref<304x16xbf16, #tpu.memory_space<vmem>>, vector<256x16xbf16>,
    %c0_3 = arith.constant 0 : index
    %c0_4 = arith.constant 0 : index
    %2 = vector.load %arg2[%c0_3, %c0_4] : memref<64x16xbf16, #tpu.memory_space<vmem>>, vector<48x16xbf16>
    %c256 = arith.constant 256 : index
    %c0_5 = arith.constant 0 : index
    %3 = vector.load %arg7[%c256, %c0_5] : memref<304x16xbf16, #tpu.memory_space<vmem>>, vector<48x16xbf16>
    tpu.vector_store %arg7[%c256, %c0_5], %2 {strides = array<i32>} : memref<304x16xbf16, #tpu.memory_space<vmem>>, vector<48x16xbf16>,
    %c0_6 = arith.constant 0 : index
    %c0_7 = arith.constant 0 : index
    %4 = vector.load %arg7[%c0_6, %c0_7] : memref<304x16xbf16, #tpu.memory_space<vmem>>, vector<256x16xbf16>
    %c0_8 = arith.constant 0 : index
    %c0_9 = arith.constant 0 : index
    %c0_10 = arith.constant 0 : index
    %5 = vector.load %arg3[%c0_8, %c0_9, %c0_10] : memref<9x16x128xbf16, #tpu.memory_space<vmem>>, vector<1x16x128xbf16>
    %6 = vector.shape_cast %5 : vector<1x16x128xbf16> to vector<16x128xbf16>
    %cst = arith.constant dense<0.000000e+00> : vector<256x128xf32>
    %7 = tpu.matmul %4, %6, %cst {dimension_numbers = #tpu.dot_dimension_numbers<[1], [0], [0], [1], [0, 0, 1, 1], [], []>} : vector<256x16xbf16>, vector<16x128xbf16>, vector<256x128xf32> -> vector<256x128xf32>
    %c0_11 = arith.constant 0 : index
    %c0_12 = arith.constant 0 : index
    %8 = vector.load %arg8[%c0_11, %c0_12] : memref<256x128xf32, #tpu.memory_space<vmem>>, vector<256x128xf32>
    tpu.vector_store %arg8[%c0_11, %c0_12], %7 {strides = array<i32>} : memref<256x128xf32, #tpu.memory_space<vmem>>, vector<256x128xf32>,
    %c1 = arith.constant 1 : index
    %c0_13 = arith.constant 0 : index
    %9 = vector.load %arg7[%c1, %c0_13] : memref<304x16xbf16, #tpu.memory_space<vmem>>, vector<256x16xbf16>
    %c1_14 = arith.constant 1 : index
    %c0_15 = arith.constant 0 : index
    %c0_16 = arith.constant 0 : index
    %10 = vector.load %arg3[%c1_14, %c0_15, %c0_16] : memref<9x16x128xbf16, #tpu.memory_space<vmem>>, vector<1x16x128xbf16>
    %11 = vector.shape_cast %10 : vector<1x16x128xbf16> to vector<16x128xbf16>
    %cst_17 = arith.constant dense<0.000000e+00> : vector<256x128xf32>
    %12 = tpu.matmul %9, %11, %cst_17 {dimension_numbers = #tpu.dot_dimension_numbers<[1], [0], [0], [1], [0, 0, 1, 1], [], []>} : vector<256x16xbf16>, vector<16x128xbf16>, vector<256x128xf32> -> vector<256x128xf32>
    %c0_18 = arith.constant 0 : index
    %c0_19 = arith.constant 0 : index
    %13 = vector.load %arg8[%c0_18, %c0_19] : memref<256x128xf32, #tpu.memory_space<vmem>>, vector<256x128xf32>
    %14 = arith.addf %13, %12 : vector<256x128xf32>
    %c0_20 = arith.constant 0 : index
    %c0_21 = arith.constant 0 : index
    %15 = vector.load %arg8[%c0_20, %c0_21] : memref<256x128xf32, #tpu.memory_space<vmem>>, vector<256x128xf32>
    tpu.vector_store %arg8[%c0_20, %c0_21], %14 {strides = array<i32>} : memref<256x128xf32, #tpu.memory_space<vmem>>, vector<256x128xf32>,
    %c2 = arith.constant 2 : index
    %c0_22 = arith.constant 0 : index
    %16 = vector.load %arg7[%c2, %c0_22] : memref<304x16xbf16, #tpu.memory_space<vmem>>, vector<256x16xbf16>
    %c2_23 = arith.constant 2 : index
    %c0_24 = arith.constant 0 : index
    %c0_25 = arith.constant 0 : index
    %17 = vector.load %arg3[%c2_23, %c0_24, %c0_25] : memref<9x16x128xbf16, #tpu.memory_space<vmem>>, vector<1x16x128xbf16>
    %18 = vector.shape_cast %17 : vector<1x16x128xbf16> to vector<16x128xbf16>
    %cst_26 = arith.constant dense<0.000000e+00> : vector<256x128xf32>
    %19 = tpu.matmul %16, %18, %cst_26 {dimension_numbers = #tpu.dot_dimension_numbers<[1], [0], [0], [1], [0, 0, 1, 1], [], []>} : vector<256x16xbf16>, vector<16x128xbf16>, vector<256x128xf32> -> vector<256x128xf32>
    %c0_27 = arith.constant 0 : index
    %c0_28 = arith.constant 0 : index
    %20 = vector.load %arg8[%c0_27, %c0_28] : memref<256x128xf32, #tpu.memory_space<vmem>>, vector<256x128xf32>
    %21 = arith.addf %20, %19 : vector<256x128xf32>
    %c0_29 = arith.constant 0 : index
    %c0_30 = arith.constant 0 : index
    %22 = vector.load %arg8[%c0_29, %c0_30] : memref<256x128xf32, #tpu.memory_space<vmem>>, vector<256x128xf32>
    tpu.vector_store %arg8[%c0_29, %c0_30], %21 {strides = array<i32>} : memref<256x128xf32, #tpu.memory_space<vmem>>, vector<256x128xf32>,
    %c18 = arith.constant 18 : index
    %c0_31 = arith.constant 0 : index
    %23 = vector.load %arg7[%c18, %c0_31] : memref<304x16xbf16, #tpu.memory_space<vmem>>, vector<256x16xbf16>
    %c3 = arith.constant 3 : index
    %c0_32 = arith.constant 0 : index
    %c0_33 = arith.constant 0 : index
    %24 = vector.load %arg3[%c3, %c0_32, %c0_33] : memref<9x16x128xbf16, #tpu.memory_space<vmem>>, vector<1x16x128xbf16>
    %25 = vector.shape_cast %24 : vector<1x16x128xbf16> to vector<16x128xbf16>
    %cst_34 = arith.constant dense<0.000000e+00> : vector<256x128xf32>
    %26 = tpu.matmul %23, %25, %cst_34 {dimension_numbers = #tpu.dot_dimension_numbers<[1], [0], [0], [1], [0, 0, 1, 1], [], []>} : vector<256x16xbf16>, vector<16x128xbf16>, vector<256x128xf32> -> vector<256x128xf32>
    %c0_35 = arith.constant 0 : index
    %c0_36 = arith.constant 0 : index
    %27 = vector.load %arg8[%c0_35, %c0_36] : memref<256x128xf32, #tpu.memory_space<vmem>>, vector<256x128xf32>
    %28 = arith.addf %27, %26 : vector<256x128xf32>
    %c0_37 = arith.constant 0 : index
    %c0_38 = arith.constant 0 : index
    %29 = vector.load %arg8[%c0_37, %c0_38] : memref<256x128xf32, #tpu.memory_space<vmem>>, vector<256x128xf32>
    tpu.vector_store %arg8[%c0_37, %c0_38], %28 {strides = array<i32>} : memref<256x128xf32, #tpu.memory_space<vmem>>, vector<256x128xf32>,
    %c19 = arith.constant 19 : index
    %c0_39 = arith.constant 0 : index
    %30 = vector.load %arg7[%c19, %c0_39] : memref<304x16xbf16, #tpu.memory_space<vmem>>, vector<256x16xbf16>
    %c4 = arith.constant 4 : index
    %c0_40 = arith.constant 0 : index
    %c0_41 = arith.constant 0 : index
    %31 = vector.load %arg3[%c4, %c0_40, %c0_41] : memref<9x16x128xbf16, #tpu.memory_space<vmem>>, vector<1x16x128xbf16>
    %32 = vector.shape_cast %31 : vector<1x16x128xbf16> to vector<16x128xbf16>
    %cst_42 = arith.constant dense<0.000000e+00> : vector<256x128xf32>
    %33 = tpu.matmul %30, %32, %cst_42 {dimension_numbers = #tpu.dot_dimension_numbers<[1], [0], [0], [1], [0, 0, 1, 1], [], []>} : vector<256x16xbf16>, vector<16x128xbf16>, vector<256x128xf32> -> vector<256x128xf32>
    %c0_43 = arith.constant 0 : index
    %c0_44 = arith.constant 0 : index
    %34 = vector.load %arg8[%c0_43, %c0_44] : memref<256x128xf32, #tpu.memory_space<vmem>>, vector<256x128xf32>
    %35 = arith.addf %34, %33 : vector<256x128xf32>
    %c0_45 = arith.constant 0 : index
    %c0_46 = arith.constant 0 : index
    %36 = vector.load %arg8[%c0_45, %c0_46] : memref<256x128xf32, #tpu.memory_space<vmem>>, vector<256x128xf32>
    tpu.vector_store %arg8[%c0_45, %c0_46], %35 {strides = array<i32>} : memref<256x128xf32, #tpu.memory_space<vmem>>, vector<256x128xf32>,
    %c20 = arith.constant 20 : index
    %c0_47 = arith.constant 0 : index
    %37 = vector.load %arg7[%c20, %c0_47] : memref<304x16xbf16, #tpu.memory_space<vmem>>, vector<256x16xbf16>
    %c5 = arith.constant 5 : index
    %c0_48 = arith.constant 0 : index
    %c0_49 = arith.constant 0 : index
    %38 = vector.load %arg3[%c5, %c0_48, %c0_49] : memref<9x16x128xbf16, #tpu.memory_space<vmem>>, vector<1x16x128xbf16>
    %39 = vector.shape_cast %38 : vector<1x16x128xbf16> to vector<16x128xbf16>
    %cst_50 = arith.constant dense<0.000000e+00> : vector<256x128xf32>
    %40 = tpu.matmul %37, %39, %cst_50 {dimension_numbers = #tpu.dot_dimension_numbers<[1], [0], [0], [1], [0, 0, 1, 1], [], []>} : vector<256x16xbf16>, vector<16x128xbf16>, vector<256x128xf32> -> vector<256x128xf32>
    %c0_51 = arith.constant 0 : index
    %c0_52 = arith.constant 0 : index
    %41 = vector.load %arg8[%c0_51, %c0_52] : memref<256x128xf32, #tpu.memory_space<vmem>>, vector<256x128xf32>
    %42 = arith.addf %41, %40 : vector<256x128xf32>
    %c0_53 = arith.constant 0 : index
    %c0_54 = arith.constant 0 : index
    %43 = vector.load %arg8[%c0_53, %c0_54] : memref<256x128xf32, #tpu.memory_space<vmem>>, vector<256x128xf32>
    tpu.vector_store %arg8[%c0_53, %c0_54], %42 {strides = array<i32>} : memref<256x128xf32, #tpu.memory_space<vmem>>, vector<256x128xf32>,
    %c36 = arith.constant 36 : index
    %c0_55 = arith.constant 0 : index
    %44 = vector.load %arg7[%c36, %c0_55] : memref<304x16xbf16, #tpu.memory_space<vmem>>, vector<256x16xbf16>
    %c6 = arith.constant 6 : index
    %c0_56 = arith.constant 0 : index
    %c0_57 = arith.constant 0 : index
    %45 = vector.load %arg3[%c6, %c0_56, %c0_57] : memref<9x16x128xbf16, #tpu.memory_space<vmem>>, vector<1x16x128xbf16>
    %46 = vector.shape_cast %45 : vector<1x16x128xbf16> to vector<16x128xbf16>
    %cst_58 = arith.constant dense<0.000000e+00> : vector<256x128xf32>
    %47 = tpu.matmul %44, %46, %cst_58 {dimension_numbers = #tpu.dot_dimension_numbers<[1], [0], [0], [1], [0, 0, 1, 1], [], []>} : vector<256x16xbf16>, vector<16x128xbf16>, vector<256x128xf32> -> vector<256x128xf32>
    %c0_59 = arith.constant 0 : index
    %c0_60 = arith.constant 0 : index
    %48 = vector.load %arg8[%c0_59, %c0_60] : memref<256x128xf32, #tpu.memory_space<vmem>>, vector<256x128xf32>
    %49 = arith.addf %48, %47 : vector<256x128xf32>
    %c0_61 = arith.constant 0 : index
    %c0_62 = arith.constant 0 : index
    %50 = vector.load %arg8[%c0_61, %c0_62] : memref<256x128xf32, #tpu.memory_space<vmem>>, vector<256x128xf32>
    tpu.vector_store %arg8[%c0_61, %c0_62], %49 {strides = array<i32>} : memref<256x128xf32, #tpu.memory_space<vmem>>, vector<256x128xf32>,
    %c37 = arith.constant 37 : index
    %c0_63 = arith.constant 0 : index
    %51 = vector.load %arg7[%c37, %c0_63] : memref<304x16xbf16, #tpu.memory_space<vmem>>, vector<256x16xbf16>
    %c7 = arith.constant 7 : index
    %c0_64 = arith.constant 0 : index
    %c0_65 = arith.constant 0 : index
    %52 = vector.load %arg3[%c7, %c0_64, %c0_65] : memref<9x16x128xbf16, #tpu.memory_space<vmem>>, vector<1x16x128xbf16>
    %53 = vector.shape_cast %52 : vector<1x16x128xbf16> to vector<16x128xbf16>
    %cst_66 = arith.constant dense<0.000000e+00> : vector<256x128xf32>
    %54 = tpu.matmul %51, %53, %cst_66 {dimension_numbers = #tpu.dot_dimension_numbers<[1], [0], [0], [1], [0, 0, 1, 1], [], []>} : vector<256x16xbf16>, vector<16x128xbf16>, vector<256x128xf32> -> vector<256x128xf32>
    %c0_67 = arith.constant 0 : index
    %c0_68 = arith.constant 0 : index
    %55 = vector.load %arg8[%c0_67, %c0_68] : memref<256x128xf32, #tpu.memory_space<vmem>>, vector<256x128xf32>
    %56 = arith.addf %55, %54 : vector<256x128xf32>
    %c0_69 = arith.constant 0 : index
    %c0_70 = arith.constant 0 : index
    %57 = vector.load %arg8[%c0_69, %c0_70] : memref<256x128xf32, #tpu.memory_space<vmem>>, vector<256x128xf32>
    tpu.vector_store %arg8[%c0_69, %c0_70], %56 {strides = array<i32>} : memref<256x128xf32, #tpu.memory_space<vmem>>, vector<256x128xf32>,
    %c38 = arith.constant 38 : index
    %c0_71 = arith.constant 0 : index
    %58 = vector.load %arg7[%c38, %c0_71] : memref<304x16xbf16, #tpu.memory_space<vmem>>, vector<256x16xbf16>
    %c8 = arith.constant 8 : index
    %c0_72 = arith.constant 0 : index
    %c0_73 = arith.constant 0 : index
    %59 = vector.load %arg3[%c8, %c0_72, %c0_73] : memref<9x16x128xbf16, #tpu.memory_space<vmem>>, vector<1x16x128xbf16>
    %60 = vector.shape_cast %59 : vector<1x16x128xbf16> to vector<16x128xbf16>
    %cst_74 = arith.constant dense<0.000000e+00> : vector<256x128xf32>
    %61 = tpu.matmul %58, %60, %cst_74 {dimension_numbers = #tpu.dot_dimension_numbers<[1], [0], [0], [1], [0, 0, 1, 1], [], []>} : vector<256x16xbf16>, vector<16x128xbf16>, vector<256x128xf32> -> vector<256x128xf32>
    %c0_75 = arith.constant 0 : index
    %c0_76 = arith.constant 0 : index
    %62 = vector.load %arg8[%c0_75, %c0_76] : memref<256x128xf32, #tpu.memory_space<vmem>>, vector<256x128xf32>
    %63 = arith.addf %62, %61 : vector<256x128xf32>
    %c0_77 = arith.constant 0 : index
    %c0_78 = arith.constant 0 : index
    %64 = vector.load %arg8[%c0_77, %c0_78] : memref<256x128xf32, #tpu.memory_space<vmem>>, vector<256x128xf32>
    tpu.vector_store %arg8[%c0_77, %c0_78], %63 {strides = array<i32>} : memref<256x128xf32, #tpu.memory_space<vmem>>, vector<256x128xf32>,
    %c0_79 = arith.constant 0 : index
    %c0_80 = arith.constant 0 : index
    %65 = vector.load %arg8[%c0_79, %c0_80] : memref<256x128xf32, #tpu.memory_space<vmem>>, vector<256x128xf32>
    %c0_81 = arith.constant 0 : index
    %c0_82 = arith.constant 0 : index
    %66 = vector.load %arg4[%c0_81, %c0_82] : memref<1x128xf32, #tpu.memory_space<vmem>>, vector<1x128xf32>
    %67 = vector.broadcast %66 : vector<1x128xf32> to vector<256x128xf32>
    %68 = arith.mulf %65, %67 : vector<256x128xf32>
    %c0_83 = arith.constant 0 : index
    %c0_84 = arith.constant 0 : index
    %69 = vector.load %arg5[%c0_83, %c0_84] : memref<256x1xf32, #tpu.memory_space<vmem>>, vector<256x1xf32>
    %70 = vector.broadcast %69 : vector<256x1xf32> to vector<256x128xf32>
    %71 = arith.mulf %68, %70 : vector<256x128xf32>
    %cst_85 = arith.constant 0.000000e+00 : f32
    %72 = vector.broadcast %cst_85 : f32 to vector<256x128xf32>
    %73 = arith.maximumf %71, %72 : vector<256x128xf32>
    %74 = arith.truncf %73 : vector<256x128xf32> to vector<256x128xbf16>
    %c0_86 = arith.constant 0 : index
    %c0_87 = arith.constant 0 : index
    %75 = vector.load %arg6[%c0_86, %c0_87] : memref<256x128xbf16, #tpu.memory_space<vmem>>, vector<256x128xbf16>
    tpu.vector_store %arg6[%c0_86, %c0_87], %74 {strides = array<i32>} : memref<256x128xbf16, #tpu.memory_space<vmem>>, vector<256x128xbf16>,
    return
  }
  func.func @transform_0(%arg0: i32) -> (i32, i32) {
    %c0_i32 = arith.constant 0 : i32
    %c0_i32_0 = arith.constant 0 : i32
    return %arg0, %c0_i32 : i32, i32
  }
  func.func @transform_1(%arg0: i32) -> (i32, i32) {
    %c1_i32 = arith.constant 1 : i32
    %0 = arith.addi %arg0, %c1_i32 : i32
    %c4_i32 = arith.constant 4 : i32
    %1 = arith.muli %0, %c4_i32 : i32
    %c0_i32 = arith.constant 0 : i32
    %c0_i32_0 = arith.constant 0 : i32
    return %1, %c0_i32 : i32, i32
  }
  func.func @transform_2(%arg0: i32) -> (i32, i32, i32) {
    %c0_i32 = arith.constant 0 : i32
    %c0_i32_0 = arith.constant 0 : i32
    %c0_i32_1 = arith.constant 0 : i32
    %c0_i32_2 = arith.constant 0 : i32
    return %c0_i32, %c0_i32_0, %c0_i32_1 : i32, i32, i32
  }
  func.func @transform_3(%arg0: i32) -> (i32, i32) {
    %c0_i32 = arith.constant 0 : i32
    %c0_i32_0 = arith.constant 0 : i32
    %c0_i32_1 = arith.constant 0 : i32
    return %c0_i32, %c0_i32_0 : i32, i32
  }
  func.func @transform_4(%arg0: i32) -> (i32, i32) {
    %c0_i32 = arith.constant 0 : i32
    %c0_i32_0 = arith.constant 0 : i32
    return %arg0, %c0_i32 : i32, i32
  }
  func.func @transform_5(%arg0: i32) -> (i32, i32) {
    %c0_i32 = arith.constant 0 : i32
    %c0_i32_0 = arith.constant 0 : i32
    return %arg0, %c0_i32 : i32, i32
  }
}

</mosaic_0001>

<bundles_post_ra>
// kernel: multiplication_with_xnor_forward.2
= control target key start
LH: loop header
LB: loop body
LE: loop exit
PB: predicated region body
PF: predicated region fallthrough
CT: control target
= control target key end

     0   :  { %vm26_vm0 = vcmask 293888   ;;  %vm332_vm1 = vcmask 289792   ;;  %vm429_vm2 = vcmask 7168   ;;  %s848_s0 = inlined_call_operand.vmem [shape: f32[128,36], index: 0, kind: input, shape index: {}]   ;;  %s849_s1 = inlined_call_operand.vmem [shape: bf16[128,36], index: 1, kind: output, shape index: {0}]   ;;  %s850_s2 = inlined_call_operand.vmem [shape: f32[128,1], index: 2, kind: output, shape index: {1}]  }
   0x1   :  { %v536_v0 = vld [vmem:[%s848_s0 + $0x10] sm:$0xff]  ;;  %v541_v1 = vld [vmem:[%s848_s0] sm:$0xff]  ;;  %v546_v2 = vld [vmem:[%s848_s0 + $0x18] sm:$0xff] }
   0x2   :  { %v33_v3 = vsel %vm26_vm0, %v536_v0, 0.0  ;;  %v27_v4 = vsel %vm26_vm0, %v541_v1, 0.0  ;;  %v555_v5 = vld [vmem:[%s848_s0 + $0x8] sm:$0xff]  ;;  %v36_v6 = vsel %vm26_vm0, %v546_v2, 0.0  ;;  %v569_v9 = vld [vmem:[%s848_s0 + $0x20] sm:$0xff]  ;;  %v578_v12 = vld [vmem:[%s848_s0 + $0x38] sm:$0xff] }
   0x3   :  { %34 = vadd.xlane.f32.xlu1 %v33_v3  ;;  %28 = vadd.xlane.f32.xlu0 %v27_v4  ;;  %v30_v7 = vsel %vm26_vm0, %v555_v5, 0.0  ;;  %v564_v8 = vld [vmem:[%s848_s0 + $0x28] sm:$0xff]  ;;  %v39_v11 = vsel %vm26_vm0, %v569_v9, 0.0  ;;  %v583_v13 = vld [vmem:[%s848_s0 + $0x30] sm:$0xff]  ;;  %v48_v14 = vsel %vm26_vm0, %v578_v12, 0.0  ;;  %v597_v17 = vld [vmem:[%s848_s0 + $0x40] sm:$0xff] }
   0x4   :  { %v42_v10 = vsel %vm26_vm0, %v564_v8, 0.0  ;;  %v45_v15 = vsel %vm26_vm0, %v583_v13, 0.0  ;;  %v592_v16 = vld [vmem:[%s848_s0 + $0x48] sm:$0xff]  ;;  %v51_v19 = vsel %vm26_vm0, %v597_v17, 0.0  ;;  %v606_v20 = vld [vmem:[%s848_s0 + $0x58] sm:$0xff]  ;;  %v611_v21 = vld [vmem:[%s848_s0 + $0x50] sm:$0xff] }
   0x5   :  { %v54_v18 = vsel %vm26_vm0, %v592_v16, 0.0  ;;  %v60_v22 = vsel %vm26_vm0, %v606_v20, 0.0  ;;  %v57_v23 = vsel %vm26_vm0, %v611_v21, 0.0  ;;  %v620_v24 = vld [vmem:[%s848_s0 + $0x68] sm:$0xff]  ;;  %v625_v25 = vld [vmem:[%s848_s0 + $0x60] sm:$0xff]  ;;  %v634_v28 = vld [vmem:[%s848_s0 + $0x78] sm:$0xff] }
   0x6   :  { %v66_v26 = vsel %vm26_vm0, %v620_v24, 0.0  ;;  %v63_v27 = vsel %vm26_vm0, %v625_v25, 0.0  ;;  %v639_v29 = vld [vmem:[%s848_s0 + $0x70] sm:$0xff]  ;;  %v72_v30 = vsel %vm26_vm0, %v634_v28, 0.0  ;;  %v350_v32 = vand.u32 2147483647, %v555_v5 }
   0x7   :  { %37 = vadd.xlane.f32.xlu1 %v36_v6  ;;  %31 = vadd.xlane.f32.xlu0 %v30_v7  ;;  %v69_v31 = vsel %vm26_vm0, %v639_v29, 0.0  ;;  %v349_v33 = vand.u32 2147483647, %v541_v1  ;;  %v352_v36 = vand.u32 2147483647, %v546_v2 }
   0x8   :  { %v368_v34 = vsel %vm26_vm0, %v350_v32, 0.0  ;;  %v351_v37 = vand.u32 2147483647, %v536_v0  ;;  %v354_v40 = vand.u32 2147483647, %v564_v8 }
   0x9   :  { %v365_v35 = vsel %vm26_vm0, %v349_v33, 0.0  ;;  %v374_v38 = vsel %vm26_vm0, %v352_v36, 0.0  ;;  %v353_v41 = vand.u32 2147483647, %v569_v9  ;;  %v356_v44 = vand.u32 2147483647, %v578_v12 }
   0xa   :  { %v371_v39 = vsel %vm26_vm0, %v351_v37, 0.0  ;;  %v380_v42 = vsel %vm26_vm0, %v354_v40, 0.0  ;;  %v355_v45 = vand.u32 2147483647, %v583_v13  ;;  %v358_v48 = vand.u32 2147483647, %v592_v16 }
   0xb   :  { %43 = vadd.xlane.f32.xlu1 %v42_v10  ;;  %40 = vadd.xlane.f32.xlu0 %v39_v11  ;;  %v377_v43 = vsel %vm26_vm0, %v353_v41, 0.0  ;;  %v386_v46 = vsel %vm26_vm0, %v356_v44, 0.0  ;;  %v357_v49 = vand.u32 2147483647, %v597_v17  ;;  %v360_v52 = vand.u32 2147483647, %v606_v20 }
   0xc   :  { %v383_v47 = vsel %vm26_vm0, %v355_v45, 0.0  ;;  %v392_v50 = vsel %vm26_vm0, %v358_v48, 0.0  ;;  %v359_v53 = vand.u32 2147483647, %v611_v21  ;;  %v362_v56 = vand.u32 2147483647, %v620_v24 }
   0xd   :  { %v389_v51 = vsel %vm26_vm0, %v357_v49, 0.0  ;;  %v398_v54 = vsel %vm26_vm0, %v360_v52, 0.0  ;;  %v361_v57 = vand.u32 2147483647, %v625_v25  ;;  %v364_v60 = vand.u32 2147483647, %v634_v28 }
   0xe   :  { %v395_v55 = vsel %vm26_vm0, %v359_v53, 0.0  ;;  %v404_v58 = vsel %vm26_vm0, %v362_v56, 0.0  ;;  %v363_v61 = vand.u32 2147483647, %v639_v29 }
   0xf   :  { %49 = vadd.xlane.f32.xlu1 %v48_v14  ;;  %46 = vadd.xlane.f32.xlu0 %v45_v15  ;;  %v401_v59 = vsel %vm26_vm0, %v361_v57, 0.0  ;;  %v410_v62 = vsel %vm26_vm0, %v364_v60, 0.0 }
  0x10   :  { %v407_v63 = vsel %vm26_vm0, %v363_v61, 0.0 }
  0x13   :  { %55 = vadd.xlane.f32.xlu1 %v54_v18  ;;  %52 = vadd.xlane.f32.xlu0 %v51_v19 }
  0x17   :  { %61 = vadd.xlane.f32.xlu1 %v60_v22  ;;  %58 = vadd.xlane.f32.xlu0 %v57_v23 }
  0x1b   :  { %67 = vadd.xlane.f32.xlu1 %v66_v26  ;;  %64 = vadd.xlane.f32.xlu0 %v63_v27 }
  0x1f   :  { %73 = vadd.xlane.f32.xlu1 %v72_v30  ;;  %70 = vadd.xlane.f32.xlu0 %v69_v31 }
  0x23   :  { %369 = vadd.xlane.f32.xlu1 %v368_v34  ;;  %366 = vadd.xlane.f32.xlu0 %v365_v35 }
  0x27   :  { %375 = vadd.xlane.f32.xlu1 %v374_v38  ;;  %372 = vadd.xlane.f32.xlu0 %v371_v39 }
  0x2b   :  { %381 = vadd.xlane.f32.xlu1 %v380_v42  ;;  %378 = vadd.xlane.f32.xlu0 %v377_v43 }
  0x2f   :  { %387 = vadd.xlane.f32.xlu1 %v386_v46  ;;  %384 = vadd.xlane.f32.xlu0 %v383_v47 }
  0x33   :  { %393 = vadd.xlane.f32.xlu1 %v392_v50  ;;  %390 = vadd.xlane.f32.xlu0 %v389_v51 }
  0x37   :  { %399 = vadd.xlane.f32.xlu1 %v398_v54  ;;  %396 = vadd.xlane.f32.xlu0 %v395_v55 }
  0x3b   :  { %405 = vadd.xlane.f32.xlu1 %v404_v58  ;;  %402 = vadd.xlane.f32.xlu0 %v401_v59 }
  0x3f   :  { %411 = vadd.xlane.f32.xlu1 %v410_v62  ;;  %408 = vadd.xlane.f32.xlu0 %v407_v63 }
  0x90   :  { %v35_v3 = vpop.xlane.xlu1 %34  ;;  %v29_v4 = vpop.xlane.xlu0 %28 }
  0x91   :  { %v78_v6 = vmul.f32 0.027777778, %v35_v3  ;;  %v76_v7 = vmul.f32 0.027777778, %v29_v4 }
  0x93   :  { %v94_v10 = vsub.f32 %v536_v0, %v78_v6  ;;  %v92_v11 = vsub.f32 %v541_v1, %v76_v7 }
  0x94   :  { %v38_v14 = vpop.xlane.xlu1 %37  ;;  %v32_v15 = vpop.xlane.xlu0 %31 }
  0x95   :  { %v456_v18 = vadd.f32 -1e-06, %v94_v10  ;;  %v454_v19 = vadd.f32 -1e-06, %v92_v11  ;;  %v79_v22 = vmul.f32 0.027777778, %v38_v14 }
  0x96   :  { %v77_v23 = vmul.f32 0.027777778, %v32_v15 }
  0x97   :  { %v126_v26 = vmax.f32 %v456_v18, 0.0  ;;  %v124_v27 = vmax.f32 %v454_v19, 0.0  ;;  %v95_v30 = vsub.f32 %v546_v2, %v79_v22 }
  0x98   :  { %v93_v31 = vsub.f32 %v555_v5, %v77_v23  ;;  %v44_v32 = vpop.xlane.xlu1 %43  ;;  %v41_v33 = vpop.xlane.xlu0 %40 }
  0x99   :  { %v142_v34 = vmul.f32 -1000.0, %v126_v26  ;;  %v140_v35 = vmul.f32 -1000.0, %v124_v27  ;;  %v457_v36 = vadd.f32 -1e-06, %v95_v30  ;;  %v81_v0 = vmul.f32 0.027777778, %v44_v32 }
  0x9a   :  { %v455_v37 = vadd.f32 -1e-06, %v93_v31  ;;  %v80_v1 = vmul.f32 0.027777778, %v41_v33 }
  0x9b   :  { %v158_v38 = vadd.f32 1.0, %v142_v34  ;;  %v156_v39 = vadd.f32 1.0, %v140_v35  ;;  %v127_v40 = vmax.f32 %v457_v36, 0.0  ;;  %v97_v41 = vsub.f32 %v564_v8, %v81_v0 }
  0x9c   :  { %v125_v42 = vmax.f32 %v455_v37, 0.0  ;;  %v96_v43 = vsub.f32 %v569_v9, %v80_v1  ;;  %v50_v44 = vpop.xlane.xlu1 %49  ;;  %v47_v2 = vpop.xlane.xlu0 %46 }
  0x9d   :  { %v174_v45 = vmax.f32 %v158_v38, 0.0  ;;  %v172_v5 = vmax.f32 %v156_v39, 0.0  ;;  %v143_v46 = vmul.f32 -1000.0, %v127_v40  ;;  %v459_v47 = vadd.f32 -1e-06, %v97_v41 }
  0x9e   :  { %v141_v48 = vmul.f32 -1000.0, %v125_v42  ;;  %v458_v49 = vadd.f32 -1e-06, %v96_v43  ;;  %v83_v50 = vmul.f32 0.027777778, %v50_v44 }
  0x9f   :  { %v190_v51 = vmul.f32 -1000.0, %v174_v45  ;;  %v188_v52 = vmul.f32 -1000.0, %v172_v5  ;;  %v159_v53 = vadd.f32 1.0, %v143_v46  ;;  %v129_v54 = vmax.f32 %v459_v47, 0.0 }
  0xa0   :  { %v157_v55 = vadd.f32 1.0, %v141_v48  ;;  %v128_v56 = vmax.f32 %v458_v49, 0.0  ;;  %v99_v8 = vsub.f32 %v578_v12, %v83_v50  ;;  %v82_v57 = vmul.f32 0.027777778, %v47_v2  ;;  %v56_v9 = vpop.xlane.xlu1 %55  ;;  %v53_v58 = vpop.xlane.xlu0 %52 }
  0xa1   :  { %v206_v59 = vadd.f32 1.0, %v190_v51  ;;  %v204_v60 = vadd.f32 1.0, %v188_v52  ;;  %v175_v61 = vmax.f32 %v159_v53, 0.0  ;;  %v145_v62 = vmul.f32 -1000.0, %v129_v54 }
  0xa2   :  { %v173_v63 = vmax.f32 %v157_v55, 0.0  ;;  %v144_v3 = vmul.f32 -1000.0, %v128_v56  ;;  %v461_v4 = vadd.f32 -1e-06, %v99_v8  ;;  %v98_v6 = vsub.f32 %v583_v13, %v82_v57 }
  0xa3   :  { %v222_v7 = vmax.f32 %v206_v59, 0.0  ;;  %v220_v10 = vmax.f32 %v204_v60, 0.0  ;;  %v191_v11 = vmul.f32 -1000.0, %v175_v61  ;;  %v161_v14 = vadd.f32 1.0, %v145_v62 }
  0xa4   :  { %v189_v15 = vmul.f32 -1000.0, %v173_v63  ;;  %v160_v18 = vadd.f32 1.0, %v144_v3  ;;  %v131_v19 = vmax.f32 %v461_v4, 0.0  ;;  %v460_v12 = vadd.f32 -1e-06, %v98_v6  ;;  %v62_v22 = vpop.xlane.xlu1 %61  ;;  %v59_v23 = vpop.xlane.xlu0 %58 }
  0xa5   :  { %v472_v26 = vadd.f32 -0.5, %v222_v7  ;;  %v470_v27 = vadd.f32 -0.5, %v220_v10  ;;  %v207_v30 = vadd.f32 1.0, %v191_v11  ;;  %v177_v31 = vmax.f32 %v161_v14, 0.0 }
  0xa6   :  { %v205_v32 = vadd.f32 1.0, %v189_v15  ;;  %v176_v33 = vmax.f32 %v160_v18, 0.0  ;;  %v147_v34 = vmul.f32 -1000.0, %v131_v19  ;;  %v130_v35 = vmax.f32 %v460_v12, 0.0 }
  0xa7   :  { %v254_v36 = vmul.f32 2.0, %v472_v26  ;;  %v252_v13 = vmul.f32 2.0, %v470_v27  ;;  %v223_v0 = vmax.f32 %v207_v30, 0.0  ;;  %v193_v37 = vmul.f32 -1000.0, %v177_v31 }
  0xa8   :  { %v221_v1 = vmax.f32 %v205_v32, 0.0  ;;  %v192_v38 = vmul.f32 -1000.0, %v176_v33  ;;  %v163_v39 = vadd.f32 1.0, %v147_v34  ;;  %v146_v40 = vmul.f32 -1000.0, %v130_v35  ;;  %v68_v41 = vpop.xlane.xlu1 %67  ;;  %v65_v42 = vpop.xlane.xlu0 %64 }
  0xa9   :  { %v504_v43 = vpack.c.bf16 %v254_v36, %v254_v36  ;;  %v502_v44 = vpack.c.bf16 %v252_v13, %v252_v13  ;;  %v473_v2 = vadd.f32 -0.5, %v223_v0  ;;  %v209_v45 = vadd.f32 1.0, %v193_v37 }
  0xaa   :  { %v471_v5 = vadd.f32 -0.5, %v221_v1  ;;  %v208_v46 = vadd.f32 1.0, %v192_v38  ;;  %v179_v47 = vmax.f32 %v163_v39, 0.0  ;;  %v162_v48 = vadd.f32 1.0, %v146_v40 }
  0xab   :  { %335 = vst.msk [vmem:[%s849_s1 + $0x8] sm:$0xf] %vm332_vm1, %v504_v43  ;;  %333 = vst.msk [vmem:[%s849_s1] sm:$0xf] %vm332_vm1, %v502_v44  ;;  %v255_v49 = vmul.f32 2.0, %v473_v2  ;;  %v225_v50 = vmax.f32 %v209_v45, 0.0 }
  0xac   :  { %v85_v51 = vmul.f32 0.027777778, %v56_v9  ;;  %v84_v52 = vmul.f32 0.027777778, %v53_v58  ;;  %v253_v53 = vmul.f32 2.0, %v471_v5  ;;  %v224_v54 = vmax.f32 %v208_v46, 0.0  ;;  %v74_v8 = vpop.xlane.xlu1 %73  ;;  %v693_v57 = vpop.xlane.xlu0 %70 }
  0xad   :  { %v195_v55 = vmul.f32 -1000.0, %v179_v47  ;;  %v178_v56 = vmax.f32 %v162_v48, 0.0  ;;  %v505_v59 = vpack.c.bf16 %v255_v49, %v255_v49  ;;  %v475_v60 = vadd.f32 -0.5, %v225_v50 }
  0xae   :  { %v101_v61 = vsub.f32 %v592_v16, %v85_v51  ;;  %v100_v62 = vsub.f32 %v597_v17, %v84_v52  ;;  %v503_v63 = vpack.c.bf16 %v253_v53, %v253_v53  ;;  %v474_v3 = vadd.f32 -0.5, %v224_v54 }
  0xaf   :  { %v211_v4 = vadd.f32 1.0, %v195_v55  ;;  %v194_v6 = vmul.f32 -1000.0, %v178_v56  ;;  %336 = vst.msk [vmem:[%s849_s1 + $0xc] sm:$0xf] %vm332_vm1, %v505_v59  ;;  %v257_v9 = vmul.f32 2.0, %v475_v60 }
  0xb0   :  { %v463_v58 = vadd.f32 -1e-06, %v101_v61  ;;  %v462_v7 = vadd.f32 -1e-06, %v100_v62  ;;  %334 = vst.msk [vmem:[%s849_s1 + $0x4] sm:$0xf] %vm332_vm1, %v503_v63  ;;  %v705_v14 = vpop.xlane.xlu1 %369  ;;  %v707_v15 = vpop.xlane.xlu0 %366 }
  0xb1   :  { %v256_v16 = vmul.f32 2.0, %v474_v3  ;;  %v227_v10 = vmax.f32 %v211_v4, 0.0  ;;  %v210_v17 = vadd.f32 1.0, %v194_v6  ;;  %v87_v11 = vmul.f32 0.027777778, %v62_v22 }
  0xb2   :  { %v507_v18 = vpack.c.bf16 %v257_v9, %v257_v9  ;;  %v133_v19 = vmax.f32 %v463_v58, 0.0  ;;  %v132_v12 = vmax.f32 %v462_v7, 0.0  ;;  %v86_v26 = vmul.f32 0.027777778, %v59_v23 }
  0xb3   :  { %v506_v27 = vpack.c.bf16 %v256_v16, %v256_v16  ;;  %v477_v30 = vadd.f32 -0.5, %v227_v10  ;;  %v226_v31 = vmax.f32 %v210_v17, 0.0  ;;  %v103_v32 = vsub.f32 %v606_v20, %v87_v11 }
  0xb4   :  { %338 = vst.msk [vmem:[%s849_s1 + $0x14] sm:$0xf] %vm332_vm1, %v507_v18  ;;  %v149_v33 = vmul.f32 -1000.0, %v133_v19  ;;  %v148_v22 = vmul.f32 -1000.0, %v132_v12  ;;  %v102_v34 = vsub.f32 %v611_v21, %v86_v26  ;;  %v89_v35 = vmul.f32 0.027777778, %v68_v41  ;;  %v719_v20 = vpop.xlane.xlu1 %375  ;;  %v721_v37 = vpop.xlane.xlu0 %372 }
  0xb5   :  { %337 = vst.msk [vmem:[%s849_s1 + $0x10] sm:$0xf] %vm332_vm1, %v506_v27  ;;  %v259_v23 = vmul.f32 2.0, %v477_v30  ;;  %v476_v36 = vadd.f32 -0.5, %v226_v31  ;;  %v465_v13 = vadd.f32 -1e-06, %v103_v32 }
  0xb6   :  { %v88_v0 = vmul.f32 0.027777778, %v65_v42  ;;  %v165_v1 = vadd.f32 1.0, %v149_v33  ;;  %v164_v38 = vadd.f32 1.0, %v148_v22  ;;  %v464_v39 = vadd.f32 -1e-06, %v102_v34 }
  0xb7   :  { %v105_v40 = vsub.f32 %v620_v24, %v89_v35  ;;  %v509_v21 = vpack.c.bf16 %v259_v23, %v259_v23  ;;  %v258_v41 = vmul.f32 2.0, %v476_v36  ;;  %v135_v43 = vmax.f32 %v465_v13, 0.0 }
  0xb8   :  { %v104_v44 = vsub.f32 %v625_v25, %v88_v0  ;;  %v181_v2 = vmax.f32 %v165_v1, 0.0  ;;  %v180_v45 = vmax.f32 %v164_v38, 0.0  ;;  %v134_v5 = vmax.f32 %v464_v39, 0.0  ;;  %v729_v50 = vpop.xlane.xlu1 %381  ;;  %v731_v24 = vpop.xlane.xlu0 %378 }
  0xb9   :  { %v467_v46 = vadd.f32 -1e-06, %v105_v40  ;;  %340 = vst.msk [vmem:[%s849_s1 + $0x1c] sm:$0xf] %vm332_vm1, %v509_v21  ;;  %v508_v42 = vpack.c.bf16 %v258_v41, %v258_v41  ;;  %v151_v47 = vmul.f32 -1000.0, %v135_v43 }
  0xba   :  { %v466_v48 = vadd.f32 -1e-06, %v104_v44  ;;  %v91_v49 = vmul.f32 0.027777778, %v74_v8  ;;  %v197_v51 = vmul.f32 -1000.0, %v181_v2  ;;  %v196_v52 = vmul.f32 -1000.0, %v180_v45 }
  0xbb   :  { %v150_v25 = vmul.f32 -1000.0, %v134_v5  ;;  %v137_v53 = vmax.f32 %v467_v46, 0.0  ;;  %339 = vst.msk [vmem:[%s849_s1 + $0x18] sm:$0xf] %vm332_vm1, %v508_v42  ;;  %v167_v54 = vadd.f32 1.0, %v151_v47 }
  0xbc   :  { %v136_v55 = vmax.f32 %v466_v48, 0.0  ;;  %v107_v56 = vsub.f32 %v634_v28, %v91_v49  ;;  %v90_v59 = vmul.f32 0.027777778, %v693_v57  ;;  %v213_v8 = vadd.f32 1.0, %v197_v51  ;;  %v740_v9 = vpop.xlane.xlu1 %387  ;;  %v742_v58 = vpop.xlane.xlu0 %384 }
  0xbd   :  { %v212_v60 = vadd.f32 1.0, %v196_v52  ;;  %v166_v61 = vadd.f32 1.0, %v150_v25  ;;  %v153_v62 = vmul.f32 -1000.0, %v137_v53  ;;  %v183_v63 = vmax.f32 %v167_v54, 0.0 }
  0xbe   :  { %v152_v3 = vmul.f32 -1000.0, %v136_v55  ;;  %v469_v4 = vadd.f32 -1e-06, %v107_v56  ;;  %v106_v6 = vsub.f32 %v639_v29, %v90_v59  ;;  %v229_v7 = vmax.f32 %v213_v8, 0.0 }
  0xbf   :  { %v228_v16 = vmax.f32 %v212_v60, 0.0  ;;  %v182_v10 = vmax.f32 %v166_v61, 0.0  ;;  %v169_v28 = vadd.f32 1.0, %v153_v62  ;;  %v199_v17 = vmul.f32 -1000.0, %v183_v63 }
  0xc0   :  { %v168_v57 = vadd.f32 1.0, %v152_v3  ;;  %v139_v11 = vmax.f32 %v469_v4, 0.0  ;;  %v468_v18 = vadd.f32 -1e-06, %v106_v6  ;;  %v479_v19 = vadd.f32 -0.5, %v229_v7  ;;  %v394_v33 = vpop.xlane.xlu1 %393  ;;  %v391_v22 = vpop.xlane.xlu0 %390 }
  0xc1   :  { %v478_v12 = vadd.f32 -0.5, %v228_v16  ;;  %v198_v26 = vmul.f32 -1000.0, %v182_v10  ;;  %v185_v27 = vmax.f32 %v169_v28, 0.0  ;;  %v215_v30 = vadd.f32 1.0, %v199_v17 }
  0xc2   :  { %v184_v31 = vmax.f32 %v168_v57, 0.0  ;;  %v155_v29 = vmul.f32 -1000.0, %v139_v11  ;;  %v138_v32 = vmax.f32 %v468_v18, 0.0  ;;  %v261_v34 = vmul.f32 2.0, %v479_v19 }
  0xc3   :  { %v260_v35 = vmul.f32 2.0, %v478_v12  ;;  %v214_v23 = vadd.f32 1.0, %v198_v26  ;;  %v201_v36 = vmul.f32 -1000.0, %v185_v27  ;;  %v231_v13 = vmax.f32 %v215_v30, 0.0 }
  0xc4   :  { %v200_v0 = vmul.f32 -1000.0, %v184_v31  ;;  %v171_v1 = vadd.f32 1.0, %v155_v29  ;;  %v154_v38 = vmul.f32 -1000.0, %v138_v32  ;;  %v511_v39 = vpack.c.bf16 %v261_v34, %v261_v34  ;;  %v400_v5 = vpop.xlane.xlu1 %399  ;;  %v397_v46 = vpop.xlane.xlu0 %396 }
  0xc5   :  { %v510_v40 = vpack.c.bf16 %v260_v35, %v260_v35  ;;  %v230_v21 = vmax.f32 %v214_v23, 0.0  ;;  %v217_v41 = vadd.f32 1.0, %v201_v36  ;;  %v481_v43 = vadd.f32 -0.5, %v231_v13 }
  0xc6   :  { %v216_v44 = vadd.f32 1.0, %v200_v0  ;;  %v187_v2 = vmax.f32 %v171_v1, 0.0  ;;  %v170_v45 = vadd.f32 1.0, %v154_v38  ;;  %342 = vst.msk [vmem:[%s849_s1 + $0x24] sm:$0xf] %vm332_vm1, %v511_v39 }
  0xc7   :  { %341 = vst.msk [vmem:[%s849_s1 + $0x20] sm:$0xf] %vm332_vm1, %v510_v40  ;;  %v480_v42 = vadd.f32 -0.5, %v230_v21  ;;  %v233_v47 = vmax.f32 %v217_v41, 0.0  ;;  %v414_v48 = vmul.f32 0.027777778, %v705_v14 }
  0xc8   :  { %v413_v49 = vmul.f32 0.027777778, %v707_v15  ;;  %v263_v51 = vmul.f32 2.0, %v481_v43  ;;  %v232_v52 = vmax.f32 %v216_v44, 0.0  ;;  %v203_v25 = vmul.f32 -1000.0, %v187_v2  ;;  %v406_v61 = vpop.xlane.xlu1 %405  ;;  %v403_v62 = vpop.xlane.xlu0 %402 }
  0xc9   :  { %v186_v53 = vmax.f32 %v170_v45, 0.0  ;;  %v262_v54 = vmul.f32 2.0, %v480_v42  ;;  %v483_v55 = vadd.f32 -0.5, %v233_v47  ;;  %431 = vst.msk [vmem:[%s850_s2 + $0x8] sm:$0xff] %vm429_vm2, %v414_v48  ;;  %v416_v14 = vmul.f32 0.027777778, %v719_v20 }
  0xca   :  { %430 = vst.msk [vmem:[%s850_s2] sm:$0xff] %vm429_vm2, %v413_v49  ;;  %v415_v15 = vmul.f32 0.027777778, %v721_v37  ;;  %v513_v56 = vpack.c.bf16 %v263_v51, %v263_v51  ;;  %v482_v59 = vadd.f32 -0.5, %v232_v52  ;;  %v219_v8 = vadd.f32 1.0, %v203_v25 }
  0xcb   :  { %v202_v60 = vmul.f32 -1000.0, %v186_v53  ;;  %v512_v63 = vpack.c.bf16 %v262_v54, %v262_v54  ;;  %v265_v3 = vmul.f32 2.0, %v483_v55  ;;  %433 = vst.msk [vmem:[%s850_s2 + $0x18] sm:$0xff] %vm429_vm2, %v416_v14  ;;  %v418_v20 = vmul.f32 0.027777778, %v729_v50 }
  0xcc   :  { %432 = vst.msk [vmem:[%s850_s2 + $0x10] sm:$0xff] %vm429_vm2, %v415_v15  ;;  %v417_v37 = vmul.f32 0.027777778, %v731_v24  ;;  %v264_v4 = vmul.f32 2.0, %v482_v59  ;;  %v235_v6 = vmax.f32 %v219_v8, 0.0  ;;  %v412_v18 = vpop.xlane.xlu1 %411  ;;  %v409_v19 = vpop.xlane.xlu0 %408 }
  0xcd   :  { %344 = vst.msk [vmem:[%s849_s1 + $0x2c] sm:$0xf] %vm332_vm1, %v513_v56  ;;  %v218_v7 = vadd.f32 1.0, %v202_v60  ;;  %v420_v16 = vmul.f32 0.027777778, %v740_v9  ;;  %v515_v10 = vpack.c.bf16 %v265_v3, %v265_v3 }
  0xce   :  { %343 = vst.msk [vmem:[%s849_s1 + $0x28] sm:$0xf] %vm332_vm1, %v512_v63  ;;  %v419_v50 = vmul.f32 0.027777778, %v742_v58  ;;  %v422_v24 = vmul.f32 0.027777778, %v394_v33  ;;  %v514_v28 = vpack.c.bf16 %v264_v4, %v264_v4 }
  0xcf   :  { %435 = vst.msk [vmem:[%s850_s2 + $0x28] sm:$0xff] %vm429_vm2, %v418_v20  ;;  %434 = vst.msk [vmem:[%s850_s2 + $0x20] sm:$0xff] %vm429_vm2, %v417_v37  ;;  %v421_v9 = vmul.f32 0.027777778, %v391_v22  ;;  %v485_v17 = vadd.f32 -0.5, %v235_v6  ;;  %v234_v57 = vmax.f32 %v218_v7, 0.0 }
  0xd0   :  { %437 = vst.msk [vmem:[%s850_s2 + $0x38] sm:$0xff] %vm429_vm2, %v420_v16  ;;  %v424_v11 = vmul.f32 0.027777778, %v400_v5  ;;  %436 = vst.msk [vmem:[%s850_s2 + $0x30] sm:$0xff] %vm429_vm2, %v419_v50  ;;  %v423_v58 = vmul.f32 0.027777778, %v397_v46 }
  0xd1   :  { %346 = vst.msk [vmem:[%s849_s1 + $0x34] sm:$0xf] %vm332_vm1, %v515_v10  ;;  %v426_v12 = vmul.f32 0.027777778, %v406_v61  ;;  %v425_v26 = vmul.f32 0.027777778, %v403_v62 }
  0xd2   :  { %439 = vst.msk [vmem:[%s850_s2 + $0x48] sm:$0xff] %vm429_vm2, %v422_v24  ;;  %438 = vst.msk [vmem:[%s850_s2 + $0x40] sm:$0xff] %vm429_vm2, %v421_v9  ;;  %v267_v27 = vmul.f32 2.0, %v485_v17  ;;  %v484_v30 = vadd.f32 -0.5, %v234_v57  ;;  %v428_v31 = vmul.f32 0.027777778, %v412_v18 }
  0xd3   :  { %345 = vst.msk [vmem:[%s849_s1 + $0x30] sm:$0xf] %vm332_vm1, %v514_v28  ;;  %v427_v29 = vmul.f32 0.027777778, %v409_v19 }
  0xd4   :  { %441 = vst.msk [vmem:[%s850_s2 + $0x58] sm:$0xff] %vm429_vm2, %v424_v11  ;;  %440 = vst.msk [vmem:[%s850_s2 + $0x50] sm:$0xff] %vm429_vm2, %v423_v58  ;;  %v517_v32 = vpack.c.bf16 %v267_v27, %v267_v27  ;;  %v266_v33 = vmul.f32 2.0, %v484_v30 }
  0xd5   :  { %443 = vst.msk [vmem:[%s850_s2 + $0x68] sm:$0xff] %vm429_vm2, %v426_v12  ;;  %442 = vst.msk [vmem:[%s850_s2 + $0x60] sm:$0xff] %vm429_vm2, %v425_v26 }
  0xd6   :  { %445 = vst.msk [vmem:[%s850_s2 + $0x78] sm:$0xff] %vm429_vm2, %v428_v31  ;;  %444 = vst.msk [vmem:[%s850_s2 + $0x70] sm:$0xff] %vm429_vm2, %v427_v29  ;;  %v516_v22 = vpack.c.bf16 %v266_v33, %v266_v33 }
  0xd7   :  { %348 = vst.msk [vmem:[%s849_s1 + $0x3c] sm:$0xf] %vm332_vm1, %v517_v32 }
  0xd8   :  { %347 = vst.msk [vmem:[%s849_s1 + $0x38] sm:$0xf] %vm332_vm1, %v516_v22 }

// kernel: multiplication_with_xnor_forward.3
= control target key start
LH: loop header
LB: loop body
LE: loop exit
PB: predicated region body
PF: predicated region fallthrough
CT: control target
= control target key end

     0   :  { %s5823_s18 = smov 0   ;;  %s6885_s0 = inlined_call_operand.vmem [shape: bf16[832,16], index: 0, kind: input, shape index: {}, may-alias: {0,1}]   ;;  %s6886_s1 = inlined_call_operand.vmem [shape: bf16[832,16], index: 1, kind: input, shape index: {}, may-alias: {0,1}]   ;;  %s6887_s2 = inlined_call_operand.vmem [shape: bf16[9,16,128], index: 2, kind: input, shape index: {}]   ;;  %s6888_s3 = inlined_call_operand.vmem [shape: f32[1,128], index: 3, kind: input, shape index: {}]   ;;  %s6889_s4 = inlined_call_operand.vmem [shape: f32[768,1], index: 4, kind: input, shape index: {}]   ;;  %s6890_s5 = inlined_call_operand.vmem [shape: bf16[768,128], index: 5, kind: output, shape index: {}]  }
   0x1 LB: > { %s4651_s19 = sadd.s32 4294967295, %s5790_s18   ;;  %p4657_p0 = scmp.ge.s32.totalorder %s5790_s18, 1  ;;  %s5790_s18 = sphi %s5823_s18, %s15_s18  }
   0x2   : > { %p226_p1 = scmp.lt.s32.totalorder %s5790_s18, 4 }
   0x4   : > { %p227_p2 = pnand %p4657_p0, %p226_p1 }
   0x6   : > { %230 = sbr.rel (%p227_p2) target bundleno = 544 (0x220), region = 40 }
   0xd   : > { %v5754_v0 = vld [vmem:[%s6887_s2] sm:$0xff]   ;;  %s5834_s22 = sshll.u32 %s4651_s19, 5  ;;  %v5758_v2 = vld [vmem:[%s6887_s2 + $0x8] sm:$0xff]   ;;  %vm435_vm0 = vcmask 130048   ;;  %v5877_v12 = vld [vmem:[%s6887_s2 + $0x10] sm:$0xff]   ;;  %vm2492_vm3 = vcmask 1045504  }
   0xe   : > { %p275_p3 = scmp.lt.s32.totalorder %s5834_s22, 103  ;;  %5179 = vmatprep.subr.bf16.mxu1 %v5754_v0  ;;  %v5840_v1 = vld [vmem:[%s6887_s2 + $0x20] sm:$0xff]   ;;  %v5850_v3 = vld [vmem:[%s6887_s2 + $0x28] sm:$0xff]   ;;  %s5010_s9 = sadd.s32 32, %s5834_s22  ;;  %vm1991_vm1 = vsmask.f32 6400 }
   0xf   : > { %5180 = vmatpush3.bf16.msra.mxu1 %v5754_v0  ;;  %5315 = vmatprep.subr.bf16.mxu0 %v5840_v1  ;;  %p5881_p4 = scmp.lt.s32.totalorder %s5010_s9, 103  ;;  %v5952_v47 = vld [vmem:[%s6887_s2 + $0x30] sm:$0xff]   ;;  %vm764_vm2 = vsmask.f32 7424  ;;  %vm1245_vm4 = vcmask 1046528   ;;  %p295_p5 = scmp.lt.s32.totalorder %s5834_s22, 95 }
  0x10   : > { %s276_s25 = scalar_select %p275_p3, %s5834_s22, 103  ;;  %5316 = vmatpush3.bf16.msra.mxu0 %v5840_v1  ;;  %5213 = vmatprep.subr.bf16.mxu1 %v5758_v2  ;;  %vm3238_vm5 = vsmask.f32 5376  ;;  %vm3739_vm6 = vcmask 1044480  }
  0x11   : > { %5349 = vmatprep.subr.bf16.mxu0 %v5850_v3  ;;  %s6955_s9 = smov (!%p5881_p4, %s5010_s9), 103  ;;  %s6957_s22 = smov (!%p295_p5, %s5834_s22), 95 }
  0x12   : > { %s4659_s30 = sshll.u32 %s276_s25, 2  ;;  %s4662_s15 = sshll.u32 %s6955_s9, 2 }
  0x13   : > { %s5856_s8 = scalar_lea.vmem %s6885_s0, %s4659_s30  ;;  %s5989_s19 = scalar_lea.vmem %s6886_s1, %s4662_s15 }
  0x14   : > { %v5755_v4 = vld [vmem:[%s5856_s8] sm:$0xff]   ;;  %v5756_v5 = vld [vmem:[%s5856_s8 + $0x8] sm:$0xff]   ;;  %v5759_v6 = vld [vmem:[%s5856_s8 + $0x10] sm:$0xff]   ;;  %s4664_s27 = sshll.u32 %s6957_s22, 3  ;;  %s4666_s10 = sshll.u32 %s6957_s22, 2 }
  0x15   : > { %436 = vst.msk [vmem:[#allocation2] sm:$0xff] %vm435_vm0, %v5755_v4  ;;  %437 = vst.msk [vmem:[#allocation2 + $0x8] sm:$0xff] %vm435_vm0, %v5756_v5  ;;  %v5761_v7 = vld [vmem:[%s5856_s8 + $0x18] sm:$0xff]   ;;  %v5762_v8 = vld [vmem:[%s5856_s8 + $0x20] sm:$0xff]   ;;  %s6481_s30 = scalar_lea.vmem %s6889_s4, %s4664_s27  ;;  %s6797_s13 = scalar_lea.vmem %s6890_s5, %s4666_s10 }
  0x16   : > { %438 = vst.msk [vmem:[#allocation2 + $0x10] sm:$0xff] %vm435_vm0, %v5759_v6  ;;  %439 = vst.msk [vmem:[#allocation2 + $0x18] sm:$0xff] %vm435_vm0, %v5761_v7  ;;  %v5763_v9 = vld [vmem:[%s5856_s8 + $0x28] sm:$0xff]   ;;  %v5764_v10 = vld [vmem:[%s5856_s8 + $0x30] sm:$0xff]  }
  0x17   : > { %440 = vst.msk [vmem:[#allocation2 + $0x20] sm:$0xff] %vm435_vm0, %v5762_v8  ;;  %441 = vst.msk [vmem:[#allocation2 + $0x28] sm:$0xff] %vm435_vm0, %v5763_v9  ;;  %v5765_v11 = vld [vmem:[%s5856_s8 + $0x38] sm:$0xff]   ;;  %v5766_v13 = vld [vmem:[%s5856_s8 + $0x40] sm:$0xff]  }
  0x18   : > { %442 = vst.msk [vmem:[#allocation2 + $0x30] sm:$0xff] %vm435_vm0, %v5764_v10  ;;  %443 = vst.msk [vmem:[#allocation2 + $0x38] sm:$0xff] %vm435_vm0, %v5765_v11  ;;  %v5767_v17 = vld [vmem:[%s5856_s8 + $0x48] sm:$0xff]   ;;  %v5769_v21 = vld [vmem:[%s5856_s8 + $0x50] sm:$0xff]  }
  0x19   : > { %444 = vst.msk [vmem:[#allocation2 + $0x40] sm:$0xff] %vm435_vm0, %v5766_v13  ;;  %445 = vst.msk [vmem:[#allocation2 + $0x48] sm:$0xff] %vm435_vm0, %v5767_v17  ;;  %v5770_v25 = vld [vmem:[%s5856_s8 + $0x58] sm:$0xff]   ;;  %v5771_v31 = vld [vmem:[%s5856_s8 + $0x60] sm:$0xff]  }
  0x1a   : > { %446 = vst.msk [vmem:[#allocation2 + $0x50] sm:$0xff] %vm435_vm0, %v5769_v21  ;;  %447 = vst.msk [vmem:[#allocation2 + $0x58] sm:$0xff] %vm435_vm0, %v5770_v25  ;;  %v5772_v37 = vld [vmem:[%s5856_s8 + $0x68] sm:$0xff]   ;;  %v5773_v63 = vld [vmem:[%s5856_s8 + $0x70] sm:$0xff]  }
  0x1b   : > { %448 = vst.msk [vmem:[#allocation2 + $0x60] sm:$0xff] %vm435_vm0, %v5771_v31  ;;  %449 = vst.msk [vmem:[#allocation2 + $0x68] sm:$0xff] %vm435_vm0, %v5772_v37  ;;  %v5774_v6 = vld [vmem:[%s5856_s8 + $0x78] sm:$0xff]   ;;  %v5776_v7 = vld [vmem:[%s5989_s19] sm:$0xff]  }
  0x1c   : > { %v5885_v14 = vld [vmem:[#allocation2] sm:$0xff]  ;;  %v5890_v15 = vld [vmem:[#allocation2 + $0x8] sm:$0xff]  ;;  %450 = vst.msk [vmem:[#allocation2 + $0x70] sm:$0xff] %vm435_vm0, %v5773_v63  ;;  %451 = vst.msk [vmem:[#allocation2 + $0x78] sm:$0xff] %vm435_vm0, %v5774_v6 }
  0x1d   : > { %5181 = vmatprep.mubr.msk.bf16.mxu1 %vm435_vm0, %v5885_v14  ;;  %v1971_v16 = vld [vmem:[#allocation2 + $0x8] sm:$0xfe]  ;;  %v5896_v18 = vld [vmem:[#allocation2 + $0x10] sm:$0xff]  ;;  %v5903_v24 = vld [vmem:[#allocation2 + $0x18] sm:$0xff]  ;;  %476 = vst.msk [vmem:[#allocation2 + $0x80] sm:$0xff] %vm435_vm0, %v5776_v7 }
  0x1e   : > { %5182 = vmatmul.mubr.msk.bf16.vlgmr.msra.gmra.mrb[0].mxu1 %vm435_vm0, %v5890_v15  ;;  %v1993_v19 = vshrl.u32 %v1971_v16, 16  ;;  %v1996_v20 = vshll.u32 %v1971_v16, 16  ;;  %v6895_v22 = vshrl.u32 %v5896_v18, 16  ;;  %v6897_v23 = vshll.u32 %v5896_v18, 16  ;;  %v5917_v30 = vld [vmem:[#allocation2 + $0x20] sm:$0xff]  ;;  %v5932_v36 = vld [vmem:[#allocation2 + $0x28] sm:$0xff] }
  0x1f   : > { %5185 = vmatprep.mubr.msk.bf16.mxu1 %vm435_vm0, %v5896_v18  ;;  %5214 = vmatpush3.bf16.msra.mxu1 %v5758_v2  ;;  %v5912_v28 = vshrl.u32 %v5903_v24, 16  ;;  %v5915_v29 = vshll.u32 %v5903_v24, 16  ;;  %v5927_v34 = vshrl.u32 %v5917_v30, 16  ;;  %v5930_v35 = vshll.u32 %v5917_v30, 16  ;;  %v5941_v42 = vld [vmem:[#allocation2 + $0x30] sm:$0xff]  ;;  %v5963_v52 = vld [vmem:[#allocation2 + $0x38] sm:$0xff] }
  0x20   : > { %v1995_v26 = vrot.slane %v1993_v19, 1  ;;  %v1998_v27 = vrot.slane %v1996_v20, 2  ;;  %5247 = vmatprep.subr.bf16.mxu1 %v5877_v12  ;;  %v2003_v32 = vrot.slane %v6895_v22, 1  ;;  %v2006_v33 = vrot.slane %v6897_v23, 2  ;;  %v5967_v56 = vld [vmem:[#allocation2 + $0x40] sm:$0xff]  ;;  %v6005_v9 = vld [vmem:[#allocation2 + $0x48] sm:$0xff] }
  0x21   : > { %v2012_v39 = vrot.slane %v5912_v28, 1  ;;  %v2015_v40 = vrot.slane %v5915_v29, 2  ;;  %v5939_v41 = vshrl.u32 %v5932_v36, 16  ;;  %v2021_v44 = vrot.slane %v5927_v34, 1  ;;  %v5777_v17 = vld [vmem:[%s5989_s19 + $0x8] sm:$0xff]   ;;  %v6077_v7 = vld [vmem:[#allocation2 + $0x50] sm:$0xff] }
  0x22   : > { %v1999_v38 = vor.u32 %v1998_v27, %v1995_v26  ;;  %v2007_v43 = vor.u32 %v2006_v33, %v2003_v32  ;;  %v2024_v45 = vrot.slane %v5930_v35, 2  ;;  %v5947_v46 = vshll.u32 %v5932_v36, 16  ;;  %477 = vst.msk [vmem:[#allocation2 + $0x88] sm:$0xff] %vm435_vm0, %v5777_v17 }
  0x23   : > { %v2016_v48 = vor.u32 %v2015_v40, %v2012_v39  ;;  %v2030_v49 = vrot.slane %v5939_v41, 1  ;;  %v5958_v50 = vshrl.u32 %v5941_v42, 16  ;;  %v5961_v51 = vshll.u32 %v5941_v42, 16  ;;  %v5780_v40 = vld [vmem:[%s5989_s19 + $0x10] sm:$0xff]  }
  0x24   : > { %v2008_v53 = vsel %vm1991_vm1, %v1999_v38, %v2007_v43  ;;  %v2025_v54 = vor.u32 %v2024_v45, %v2021_v44  ;;  %v2033_v55 = vrot.slane %v5947_v46, 2  ;;  %v5980_v61 = vshrl.u32 %v5963_v52, 16  ;;  %478 = vst.msk [vmem:[#allocation2 + $0x90] sm:$0xff] %vm435_vm0, %v5780_v40  ;;  %v6112_v40 = vld [vmem:[%s6887_s2 + $0x38] sm:$0xff]  }
  0x25   : > { %5317 = vmatprep.mubr.msk.bf16.mxu0 %vm435_vm0, %v2008_v53  ;;  %v2017_v57 = vsel %vm1991_vm1, %v2007_v43, %v2016_v48  ;;  %v2039_v58 = vrot.slane %v5958_v50, 1  ;;  %v2042_v59 = vrot.slane %v5961_v51, 2  ;;  %v5983_v62 = vshll.u32 %v5963_v52, 16 }
  0x26   : > { %5186 = vmatmul.mubr.msk.bf16.gmra.mrb[4].mxu1 %vm435_vm0, %v5903_v24  ;;  %5318 = vmatmul.mubr.msk.bf16.vlgmr.msra.gmra.mrb[0].mxu0 %vm435_vm0, %v2017_v57  ;;  %v2026_v60 = vsel %vm1991_vm1, %v2016_v48, %v2025_v54  ;;  %v2034_v0 = vor.u32 %v2033_v55, %v2030_v49  ;;  %v5994_v2 = vshrl.u32 %v5967_v56, 16  ;;  %v5997_v4 = vshll.u32 %v5967_v56, 16  ;;  %v2455_v48 = vld [vmem:[#allocation2 + $0x8] sm:$0xfc] }
  0x27   : > { %5189 = vmatprep.mubr.msk.bf16.mxu1 %vm435_vm0, %v5917_v30  ;;  %5350 = vmatpush3.bf16.msra.mxu0 %v5850_v3  ;;  %v2043_v5 = vor.u32 %v2042_v59, %v2039_v58  ;;  %v2048_v8 = vrot.slane %v5980_v61, 1  ;;  %v2051_v3 = vrot.slane %v5983_v62, 2  ;;  %v6020_v19 = vshrl.u32 %v6005_v9, 16 }
  0x28   : > { %5321 = vmatprep.mubr.msk.bf16.mxu0 %vm435_vm0, %v2026_v60  ;;  %5383 = vmatprep.subr.bf16.mxu0 %v5952_v47  ;;  %v2035_v10 = vsel %vm1991_vm1, %v2025_v54, %v2034_v0  ;;  %v2057_v11 = vrot.slane %v5994_v2, 1  ;;  %v2060_v13 = vrot.slane %v5997_v4, 2  ;;  %v6024_v21 = vshll.u32 %v6005_v9, 16 }
  0x29   : > { %v2044_v16 = vsel %vm1991_vm1, %v2034_v0, %v2043_v5  ;;  %v2052_v20 = vor.u32 %v2051_v3, %v2048_v8  ;;  %v6894_v26 = vrot.slane %v5915_v29, 1  ;;  %v799_v27 = vrot.slane %v5930_v35, 1 }
  0x2a   : > { %v2061_v25 = vor.u32 %v2060_v13, %v2057_v11  ;;  %v2066_v31 = vrot.slane %v6020_v19, 1  ;;  %v2069_v37 = vrot.slane %v6024_v21, 2  ;;  %v6893_v39 = vrot.slane %v5947_v46, 1  ;;  %v6091_v13 = vld [vmem:[#allocation2 + $0x58] sm:$0xff] }
  0x2b   : > { %v795_v32 = vor.u32 %v5912_v28, %v6894_v26  ;;  %v2053_v33 = vsel %vm1991_vm1, %v2043_v5, %v2052_v20  ;;  %v6036_v38 = vor.u32 %v5927_v34, %v799_v27  ;;  %v815_v45 = vrot.slane %v5961_v51, 1  ;;  %v6185_v26 = vld [vmem:[#allocation2 + $0x70] sm:$0xff] }
  0x2c   : > { %v2062_v43 = vsel %vm1991_vm1, %v2052_v20, %v2061_v25  ;;  %v811_v49 = vor.u32 %v5939_v41, %v6893_v39  ;;  %v6892_v54 = vrot.slane %v5983_v62, 1  ;;  %v6059_v55 = vor.u32 %v2069_v37, %v2066_v31  ;;  %v6107_v37 = vld [vmem:[#allocation2 + $0x80] sm:$0xff] }
  0x2d   : > { %v6042_v44 = vsel %vm764_vm2, %v795_v32, %v799_v27  ;;  %v6055_v53 = vor.u32 %v5958_v50, %v815_v45  ;;  %v831_v58 = vrot.slane %v5997_v4, 1  ;;  %v2493_v59 = vrot.slane %v2455_v48, 2  ;;  %6914 = vst [vmem:[#allocation5_spill] sm:$0xff] %v6107_v37  ;;  %v6116_v48 = vld [vmem:[#allocation2 + $0x88] sm:$0xff] }
  0x2e   : > { %5190 = vmatmul.mubr.msk.bf16.gmra.mrb[8].mxu1 %vm435_vm0, %v5932_v36  ;;  %5322 = vmatmul.mubr.msk.bf16.gmra.mrb[4].mxu0 %vm435_vm0, %v2035_v10  ;;  %6913 = vst [vmem:[#allocation4_spill] sm:$0xff] %v6059_v55  ;;  %v6062_v57 = vsel %vm764_vm2, %v811_v49, %v815_v45  ;;  %v2494_v60 = vrot.slane %v5896_v18, 2  ;;  %v827_v63 = vor.u32 %v5980_v61, %v6892_v54  ;;  %v6087_v3 = vrot.slane %v5903_v24, 2 }
  0x2f   : > { %5193 = vmatprep.mubr.msk.bf16.mxu1 %vm435_vm0, %v5941_v42  ;;  %5325 = vmatprep.mubr.msk.bf16.mxu0 %vm435_vm0, %v2044_v16  ;;  %v6070_v0 = vor.u32 %v5994_v2, %v831_v58  ;;  %v2071_v6 = vsel %vm1991_vm1, %v2061_v25, %v6059_v55  ;;  %v2498_v10 = vrot.slane %v5917_v30, 2  ;;  %v768_v11 = vshll.u32 %v5885_v14, 16  ;;  %v6097_v25 = vld [vmem:[#allocation2 + $0x60] sm:$0xff] }
  0x30   : > { %v6073_v5 = vsel %vm764_vm2, %v827_v63, %v831_v58  ;;  %v2495_v8 = vsel %vm2492_vm3, %v2493_v59, %v2494_v60  ;;  %v766_v16 = vshrl.u32 %v5885_v14, 16  ;;  %v6891_v17 = vrot.slane %v5890_v15, 1 }
  0x31   : > { %v2497_v20 = vsel %vm2492_vm3, %v2494_v60, %v6087_v3  ;;  %v2500_v27 = vrot.slane %v5932_v36, 2  ;;  %v1249_v31 = vrot.slane %v5896_v18, 1  ;;  %v1251_v32 = vrot.slane %v5903_v24, 1 }
  0x32   : > { %v6898_v14 = vrot.slane %v5941_v42, 2  ;;  %v1255_v45 = vrot.slane %v5932_v36, 1  ;;  %v770_v24 = vrot.slane %v768_v11, 1  ;;  %v1257_v59 = vrot.slane %v5941_v42, 1 }
  0x33   : > { %v6123_v49 = vsel %vm1245_vm4, %v6891_v17, %v1249_v31  ;;  %v6126_v58 = vsel %vm1245_vm4, %v1249_v31, %v1251_v32  ;;  %v1259_v60 = vrot.slane %v5963_v52, 1  ;;  %v1261_v63 = vrot.slane %v5967_v56, 1 }
  0x34   : > { %v6896_v11 = vrot.slane %v6116_v48, 2  ;;  %v2504_v31 = vrot.slane %v5963_v52, 2  ;;  %v6161_v17 = vsel %vm2492_vm3, %v2498_v10, %v2500_v27  ;;  %v773_v54 = vshll.u32 %v5890_v15, 16 }
  0x35   : > { %v3250_v39 = vrot.slane %v5912_v28, 2  ;;  %v771_v22 = vor.u32 %v770_v24, %v766_v16  ;;  %v3259_v23 = vrot.slane %v5927_v34, 2  ;;  %v1269_v55 = vrot.slane %v6097_v25, 1 }
  0x36   : > { %5194 = vmatmul.mubr.msk.bf16.gmra.mrb[12].mxu1 %vm435_vm0, %v5963_v52  ;;  %5326 = vmatmul.mubr.msk.bf16.gmra.mrb[8].mxu0 %vm435_vm0, %v2053_v33  ;;  %v6104_v33 = vsel %vm2492_vm3, %v6087_v3, %v2498_v10  ;;  %v3271_v24 = vrot.slane %v5947_v46, 3 }
  0x37   : > { %5197 = vmatprep.mubr.msk.bf16.mxu1 %vm435_vm0, %v5967_v56  ;;  %5329 = vmatprep.mubr.msk.bf16.mxu0 %vm435_vm0, %v2062_v43  ;;  %v1253_v43 = vrot.slane %v5917_v30, 1 }
  0x39   : > { %v6133_v30 = vsel %vm1245_vm4, %v1251_v32, %v1253_v43  ;;  %v6136_v36 = vsel %vm1245_vm4, %v1253_v43, %v1255_v45  ;;  %v6154_v32 = vsel %vm1245_vm4, %v1257_v59, %v1259_v60  ;;  %v1265_v43 = vrot.slane %v6077_v7, 1 }
  0x3e   : > { %5198 = vmatmul.mubr.msk.bf16.gmra.mrb[16].mxu1 %vm435_vm0, %v6005_v9  ;;  %5330 = vmatmul.mubr.msk.bf16.gmra.mrb[12].mxu0 %vm435_vm0, %v2071_v6  ;;  %v6144_v6 = vrot.slane %v6107_v37, 2  ;;  %v6220_v37 = vld [vmem:[#allocation2 + $0x78] sm:$0xff] }
  0x3f   : > { %5201 = vmatprep.mubr.msk.bf16.mxu1 %vm435_vm0, %v6077_v7  ;;  %5351 = vmatprep.mubr.msk.bf16.mxu0 %vm435_vm0, %v2495_v8  ;;  %v6147_v8 = vsel %vm1245_vm4, %v1255_v45, %v1257_v59  ;;  %v6166_v45 = vsel %vm2492_vm3, %v2500_v27, %v6898_v14  ;;  %v3253_v27 = vrot.slane %v5915_v29, 3 }
  0x40   : > { %v6172_v52 = vsel %vm2492_vm3, %v6144_v6, %v6896_v11  ;;  %v1267_v11 = vrot.slane %v6091_v13, 1 }
  0x41   : > { %v6190_v14 = vor.u32 %v3253_v27, %v3250_v39  ;;  %v3277_v39 = vrot.slane %v5958_v50, 2 }
  0x42   : > { %v6197_v28 = vsel %vm1245_vm4, %v1265_v43, %v1267_v11 }
  0x43   : > { %6915 = vst [vmem:[#allocation6_spill] sm:$0xff] %v6197_v28 }
  0x46   : > { %5202 = vmatmul.mubr.msk.bf16.gmra.mrb[20].mxu1 %vm435_vm0, %v6091_v13  ;;  %5352 = vmatmul.mubr.msk.bf16.vlgmr.msra.gmra.mrb[0].mxu0 %vm435_vm0, %v2497_v20  ;;  %v1263_v20 = vrot.slane %v6005_v9, 1 }
  0x47   : > { %5205 = vmatprep.mubr.msk.bf16.mxu1 %vm435_vm0, %v6097_v25  ;;  %5384 = vmatpush3.bf16.msra.mxu0 %v5952_v47  ;;  %v6157_v47 = vsel %vm1245_vm4, %v1259_v60, %v1261_v63  ;;  %v6177_v60 = vld [vmem:[#allocation2 + $0x68] sm:$0xff] }
  0x48   : > { %5355 = vmatprep.mubr.msk.bf16.mxu0 %vm435_vm0, %v6104_v33  ;;  %5417 = vmatprep.subr.bf16.mxu0 %v6112_v40  ;;  %v6175_v59 = vsel %vm1245_vm4, %v1261_v63, %v1263_v20  ;;  %v6181_v10 = vsel %vm1245_vm4, %v1263_v20, %v1265_v43  ;;  %v3262_v63 = vrot.slane %v5930_v35, 3  ;;  %v3268_v20 = vrot.slane %v5939_v41, 2 }
  0x49   : > { %v1271_v34 = vrot.slane %v6177_v60, 1  ;;  %v775_v35 = vrot.slane %v773_v54, 1  ;;  %v6206_v41 = vsel %vm1245_vm4, %v1267_v11, %v1269_v55  ;;  %v3280_v43 = vrot.slane %v5961_v51, 3 }
  0x4a   : > { %v3263_v16 = vor.u32 %v3262_v63, %v3259_v23  ;;  %6916 = vst [vmem:[#allocation7_spill] sm:$0xff] %v6206_v41  ;;  %v3272_v27 = vor.u32 %v3271_v24, %v3268_v20  ;;  %v1273_v54 = vrot.slane %v6185_v26, 1  ;;  %v2506_v11 = vrot.slane %v5967_v56, 2 }
  0x4b   : > { %v6217_v63 = vsel %vm1245_vm4, %v1269_v55, %v1271_v34  ;;  %v3281_v50 = vor.u32 %v3280_v43, %v3277_v39  ;;  %v3286_v51 = vrot.slane %v5980_v61, 2  ;;  %v3289_v41 = vrot.slane %v5983_v62, 3 }
  0x4c   : > { %v6214_v23 = vsel %vm3238_vm5, %v6190_v14, %v3263_v16  ;;  %6918 = vst [vmem:[#allocation9_spill] sm:$0xff] %v6217_v63  ;;  %v6226_v28 = vsel %vm3238_vm5, %v3263_v16, %v3272_v27  ;;  %v6902_v55 = vrot.slane %v6220_v37, 1  ;;  %v3295_v20 = vrot.slane %v5994_v2, 2 }
  0x4d   : > { %6917 = vst [vmem:[#allocation8_spill] sm:$0xff] %v6214_v23  ;;  %v6229_v23 = vsel %vm1245_vm4, %v1271_v34, %v1273_v54  ;;  %v777_v24 = vshrl.u32 %v5890_v15, 16  ;;  %v6235_v63 = vsel %vm3238_vm5, %v3272_v27, %v3281_v50  ;;  %v3290_v56 = vor.u32 %v3289_v41, %v3286_v51 }
  0x4e   : > { %5206 = vmatmul.mubr.msk.bf16.gmra.mrb[24].mxu1 %vm435_vm0, %v6177_v60  ;;  %5356 = vmatmul.mubr.msk.bf16.gmra.mrb[4].mxu0 %vm435_vm0, %v6161_v17  ;;  %v3298_v61 = vrot.slane %v5997_v4, 3  ;;  %v6919_v39 = vrot.slane %v5941_v42, 2  ;;  %v776_v34 = vsel %vm764_vm2, %v771_v22, %v775_v35  ;;  %v6247_v43 = vsel %vm1245_vm4, %v1273_v54, %v6902_v55 }
  0x4f   : > { %5209 = vmatprep.mubr.msk.bf16.mxu1 %vm435_vm0, %v6185_v26  ;;  %5359 = vmatprep.mubr.msk.bf16.mxu0 %vm435_vm0, %v6166_v45  ;;  %v6250_v2 = vsel %vm2492_vm3, %v2504_v31, %v2506_v11  ;;  %v6253_v27 = vsel %vm3238_vm5, %v3281_v50, %v3290_v56  ;;  %v6921_v42 = vshll.u32 %v5896_v18, 16  ;;  %v6904_v22 = vshll.u32 %v6077_v7, 16 }
  0x50   : > { %v6241_v16 = vsel %vm2492_vm3, %v6919_v39, %v2504_v31  ;;  %6920 = vst [vmem:[#allocation10_spill] sm:$0xff] %v6253_v27  ;;  %v3299_v41 = vor.u32 %v3298_v61, %v3295_v20  ;;  %v6903_v51 = vshrl.u32 %v6077_v7, 16  ;;  %v779_v54 = vor.u32 %v777_v24, %v775_v35 }
  0x51   : > { %v783_v4 = vrot.slane %v6921_v42, 1  ;;  %v3304_v50 = vrot.slane %v6020_v19, 2  ;;  %v3307_v20 = vrot.slane %v6024_v21, 3  ;;  %v2508_v61 = vrot.slane %v6005_v9, 2 }
  0x52   : > { %v6265_v31 = vsel %vm3238_vm5, %v3290_v56, %v3299_v41  ;;  %v6923_v39 = vshrl.u32 %v5896_v18, 16  ;;  %v3313_v35 = vrot.slane %v6903_v51, 2  ;;  %v3316_v24 = vrot.slane %v6904_v22, 3 }
  0x53   : > { %6922 = vst [vmem:[#allocation11_spill] sm:$0xff] %v6265_v31  ;;  %v2510_v56 = vrot.slane %v6077_v7, 2  ;;  %v784_v31 = vsel %vm764_vm2, %v779_v54, %v783_v4  ;;  %v6284_v9 = vsel %vm2492_vm3, %v2506_v11, %v2508_v61  ;;  %v6924_v18 = vrot.slane %v5915_v29, 1 }
  0x54   : > { %v787_v42 = vor.u32 %v6923_v39, %v783_v4  ;;  %v3317_v55 = vor.u32 %v3316_v24, %v3313_v35  ;;  %v6906_v4 = vshrl.u32 %v6091_v13, 16  ;;  %v6907_v29 = vshll.u32 %v6097_v25, 16 }
  0x55   : > { %v6293_v22 = vsel %vm2492_vm3, %v2508_v61, %v2510_v56  ;;  %v6905_v11 = vshrl.u32 %v6097_v25, 16  ;;  %v2514_v35 = vrot.slane %v6097_v25, 2 }
  0x56   : > { %5210 = vmatmul.mubr.msk.bf16.gmra.mrb[28].mxu1 %vm435_vm0, %v6220_v37  ;;  %5360 = vmatmul.mubr.msk.bf16.gmra.mrb[8].mxu0 %vm435_vm0, %v6241_v16  ;;  %v792_v39 = vsel %vm764_vm2, %v787_v42, %v6924_v18  ;;  %v3322_v54 = vrot.slane %v6906_v4, 2  ;;  %v3334_v42 = vrot.slane %v6907_v29, 3 }
  0x57   : > { %5215 = vmatprep.mubr.msk.bf16.mxu1 %vm435_vm0, %v776_v34  ;;  %5363 = vmatprep.mubr.msk.bf16.mxu0 %vm435_vm0, %v6250_v2  ;;  %v3308_v34 = vor.u32 %v3307_v20, %v3304_v50  ;;  %v6908_v50 = vshll.u32 %v6091_v13, 16  ;;  %v3331_v61 = vrot.slane %v6905_v11, 2 }
  0x59   : > { %v6281_v27 = vsel %vm3238_vm5, %v3299_v41, %v3308_v34  ;;  %v6290_v51 = vsel %vm3238_vm5, %v3308_v34, %v3317_v55  ;;  %v6300_v41 = vld [vmem:[%s6887_s2 + $0x18] sm:$0xff]   ;;  %v3325_v20 = vrot.slane %v6908_v50, 3  ;;  %v3335_v34 = vor.u32 %v3334_v42, %v3331_v61 }
  0x5a   : > { %v2518_v42 = vrot.slane %v6185_v26, 2 }
  0x5b   : > { %v3326_v24 = vor.u32 %v3325_v20, %v3322_v54  ;;  %v869_v54 = vshll.u32 %v6177_v60, 16  ;;  %v6909_v20 = vshrl.u32 %v6177_v60, 16 }
  0x5d   : > { %v6323_v18 = vsel %vm3238_vm5, %v3317_v55, %v3326_v24  ;;  %v6333_v4 = vsel %vm3238_vm5, %v3326_v24, %v3335_v34  ;;  %v877_v55 = vshll.u32 %v6185_v26, 16 }
  0x5e   : > { %5216 = vmatmul.mubr.msk.bf16.vlgmr.msra.gmra.mrb[0].mxu1 %vm435_vm0, %v784_v31  ;;  %5364 = vmatmul.mubr.msk.bf16.gmra.mrb[12].mxu0 %vm435_vm0, %v6284_v9  ;;  %v2512_v31 = vrot.slane %v6091_v13, 2  ;;  %6925 = vst [vmem:[#allocation12_spill] sm:$0xff] %v6323_v18  ;;  %6927 = vst [vmem:[#allocation13_spill] sm:$0xff] %v6333_v4 }
  0x5f   : > { %5219 = vmatprep.mubr.msk.bf16.mxu1 %vm435_vm0, %v792_v39  ;;  %5367 = vmatprep.mubr.msk.bf16.mxu0 %vm435_vm0, %v6293_v22  ;;  %v3352_v61 = vrot.slane %v877_v55, 3 }
  0x60   : > { %5248 = vmatpush3.bf16.msra.mxu1 %v5877_v12  ;;  %v6326_v39 = vsel %vm2492_vm3, %v2510_v56, %v2512_v31  ;;  %v6926_v12 = vrot.slane %v5947_v46, 1  ;;  %v6336_v29 = vsel %vm2492_vm3, %v2512_v31, %v2514_v35  ;;  %v6910_v46 = vshrl.u32 %v6185_v26, 16 }
  0x61   : > { %5281 = vmatprep.subr.bf16.mxu1 %v6300_v41  ;;  %v3343_v56 = vrot.slane %v869_v54, 3  ;;  %v2516_v31 = vrot.slane %v6177_v60, 2 }
  0x62   : > { %v808_v11 = vsel %vm764_vm2, %v6036_v38, %v6926_v12  ;;  %v3340_v38 = vrot.slane %v6909_v20, 2  ;;  %v6928_v20 = vrot.slane %v5983_v62, 1 }
  0x64   : > { %v3344_v24 = vor.u32 %v3343_v56, %v3340_v38  ;;  %v824_v4 = vsel %vm764_vm2, %v6055_v53, %v6928_v20  ;;  %v885_v38 = vshll.u32 %v6220_v37, 16  ;;  %v889_v56 = vshrl.u32 %v6220_v37, 16 }
  0x66   : > { %5220 = vmatmul.mubr.msk.bf16.gmra.mrb[4].mxu1 %vm435_vm0, %v6042_v44  ;;  %5368 = vmatmul.mubr.msk.bf16.gmra.mrb[16].mxu0 %vm435_vm0, %v6326_v39  ;;  %v3349_v44 = vrot.slane %v6910_v46, 2  ;;  %v6356_v50 = vsel %vm3238_vm5, %v3335_v34, %v3344_v24  ;;  %v6369_v46 = vsel %vm2492_vm3, %v2516_v31, %v2518_v42  ;;  %v3358_v62 = vrot.slane %v889_v56, 2 }
  0x67   : > { %5223 = vmatprep.mubr.msk.bf16.mxu1 %vm435_vm0, %v808_v11  ;;  %5371 = vmatprep.mubr.msk.bf16.mxu0 %vm435_vm0, %v6336_v29  ;;  %v6359_v11 = vsel %vm2492_vm3, %v2514_v35, %v2516_v31  ;;  %v3361_v53 = vrot.slane %v885_v38, 3  ;;  %v2520_v35 = vrot.slane %v6220_v37, 2  ;;  %v839_v34 = vrot.slane %v6024_v21, 1 }
  0x68   : > { %v3353_v12 = vor.u32 %v3352_v61, %v3349_v44  ;;  %v2471_v61 = vld [vmem:[#allocation2 + $0x88] sm:$0x3]  ;;  %v6931_v21 = vshll.u32 %v6077_v7, 16 }
  0x69   : > { %v6382_v20 = vor.u32 %v3361_v53, %v3358_v62  ;;  %v6395_v44 = vsel %vm2492_vm3, %v2520_v35, %v6144_v6  ;;  %v2837_v62 = vld [vmem:[#allocation2 + $0x10] sm:$0xfc] }
  0x6a   : > { %v6366_v18 = vsel %vm3238_vm5, %v3344_v24, %v3353_v12  ;;  %v847_v24 = vrot.slane %v6931_v21, 1 }
  0x6b   : > { %6929 = vst [vmem:[#allocation14_spill] sm:$0xff] %v6382_v20  ;;  %v6386_v31 = vsel %vm3238_vm5, %v3353_v12, %v6382_v20  ;;  %v6932_v12 = vshrl.u32 %v6077_v7, 16  ;;  %v2874_v20 = vrot.slane %v2837_v62, 2 }
  0x6c   : > { %6930 = vst [vmem:[#allocation15_spill] sm:$0xff] %v6386_v31 }
  0x6d   : > { %v851_v53 = vor.u32 %v6932_v12, %v847_v24 }
  0x6e   : > { %5224 = vmatmul.mubr.msk.bf16.gmra.mrb[8].mxu1 %vm435_vm0, %v6062_v57  ;;  %5372 = vmatmul.mubr.msk.bf16.gmra.mrb[20].mxu0 %vm435_vm0, %v6359_v11  ;;  %v6389_v57 = vsel %vm2492_vm3, %v2518_v42, %v2520_v35  ;;  %v843_v42 = vor.u32 %v6020_v19, %v839_v34  ;;  %v2876_v19 = vsel %vm2492_vm3, %v2874_v20, %v6087_v3 }
  0x6f   : > { %5227 = vmatprep.mubr.msk.bf16.mxu1 %vm435_vm0, %v824_v4  ;;  %5375 = vmatprep.mubr.msk.bf16.mxu0 %vm435_vm0, %v6369_v46  ;;  %v840_v4 = vsel %vm764_vm2, %v6070_v0, %v839_v34  ;;  %v2524_v0 = vrot.slane %v2471_v61, 2  ;;  %v6934_v34 = vshll.u32 %v6097_v25, 16  ;;  %v6935_v61 = vshrl.u32 %v6091_v13, 16 }
  0x70   : > { %v848_v21 = vsel %vm764_vm2, %v843_v42, %v847_v24  ;;  %v871_v42 = vrot.slane %v869_v54, 1  ;;  %v6938_v54 = vshrl.u32 %v6185_v26, 16 }
  0x71   : > { %v2525_v31 = vsel %vm2492_vm3, %v6144_v6, %v2524_v0  ;;  %v863_v7 = vrot.slane %v6934_v34, 1  ;;  %v6936_v6 = vshrl.u32 %v6097_v25, 16  ;;  %v6432_v0 = vld [vmem:[%s6887_s2 + $0x40] sm:$0xff]  }
  0x73   : > { %v867_v62 = vor.u32 %v6936_v6, %v863_v7  ;;  %v4172_v6 = vld [vmem:[%s6481_s30 + $0x88] sm:$0xff] }
  0x75   : > { %v872_v20 = vsel %vm764_vm2, %v867_v62, %v871_v42  ;;  %v4171_v62 = vld [vmem:[%s6481_s30 + $0x80] sm:$0xff] }
  0x76   : > { %5228 = vmatmul.mubr.msk.bf16.gmra.mrb[12].mxu1 %vm435_vm0, %v6073_v5  ;;  %5376 = vmatmul.mubr.msk.bf16.gmra.mrb[24].mxu0 %vm435_vm0, %v6389_v57  ;;  %v6933_v5 = vshll.u32 %v6091_v13, 16  ;;  %v6937_v13 = vshrl.u32 %v6177_v60, 16  ;;  %v1208_v60 = vld [vmem:[#allocation2] sm:$0xfe] }
  0x77   : > { %5231 = vmatprep.mubr.msk.bf16.mxu1 %vm435_vm0, %v840_v4  ;;  %5379 = vmatprep.mubr.msk.bf16.mxu0 %vm435_vm0, %v6395_v44 }
  0x78   : > { %v855_v35 = vrot.slane %v6933_v5, 1  ;;  %v875_v25 = vor.u32 %v6937_v13, %v871_v42  ;;  %v760_v5 = vld [vmem:[#allocation2 + $0x80] sm:$0x1]  ;;  %v6942_v42 = vld [vmem:[#allocation7_spill] sm:$0xff] }
  0x79   : > { %v4175_v13 = vld [vmem:[%s6481_s30 + $0xa0] sm:$0xff] }
  0x7a   : > { %v856_v4 = vsel %vm764_vm2, %v851_v53, %v855_v35  ;;  %v859_v24 = vor.u32 %v6935_v61, %v855_v35  ;;  %v887_v53 = vrot.slane %v885_v38, 1  ;;  %v6940_v61 = vrot.slane %v6116_v48, 2 }
  0x7c   : > { %v864_v3 = vsel %vm764_vm2, %v859_v24, %v863_v7  ;;  %v891_v26 = vor.u32 %v889_v56, %v887_v53  ;;  %v4167_v7 = vld [vmem:[%s6481_s30 + $0x60] sm:$0xff]  ;;  %v4169_v24 = vld [vmem:[%s6481_s30 + $0x70] sm:$0xff] }
  0x7e   : > { %5232 = vmatmul.mubr.msk.bf16.gmra.mrb[16].mxu1 %vm435_vm0, %v848_v21  ;;  %5380 = vmatmul.mubr.msk.bf16.gmra.mrb[28].mxu0 %vm435_vm0, %v2525_v31  ;;  %v879_v31 = vrot.slane %v877_v55, 1  ;;  %v6939_v21 = vrot.slane %v5890_v15, 1  ;;  %v5792_v15 = vmov 0  }
  0x7f   : > { %5235 = vmatprep.mubr.msk.bf16.mxu1 %vm435_vm0, %v856_v4  ;;  %5385 = vmatprep.mubr.msk.bf16.mxu0 %vm435_vm0, %v2876_v19  ;;  %v4165_v19 = vld [vmem:[%s6481_s30 + $0x50] sm:$0xff] }
  0x80   : > { %v883_v12 = vor.u32 %v6938_v54, %v879_v31  ;;  %v880_v55 = vsel %vm764_vm2, %v875_v25, %v879_v31  ;;  %5753 = vset.pattern.permute.xlu1 %v5792_v15  ;;  %5752 = vset.pattern.permute.xlu0 %v5792_v15  ;;  %v4176_v31 = vld [vmem:[%s6481_s30 + $0xa8] sm:$0xff]  ;;  %v4178_v25 = vld [vmem:[%s6481_s30 + $0xb8] sm:$0xff]  ;;  %v1224_v54 = vld [vmem:[#allocation2 + $0x80] sm:$0x1] }
  0x82   : > { %v888_v35 = vsel %vm764_vm2, %v883_v12, %v887_v53  ;;  %v1590_v12 = vld [vmem:[#allocation2 + $0x8] sm:$0xfe]  ;;  %v1591_v53 = vld [vmem:[#allocation2 + $0x10] sm:$0xff] }
  0x86   : > { %5236 = vmatmul.mubr.msk.bf16.gmra.mrb[20].mxu1 %vm435_vm0, %v864_v3  ;;  %5386 = vmatmul.mubr.msk.bf16.vlgmr.msra.gmra.mrb[0].mxu0 %vm435_vm0, %v6104_v33  ;;  %v893_v33 = vshll.u32 %v760_v5, 16  ;;  %v6943_v3 = vld [vmem:[#allocation8_spill] sm:$0xff]  ;;  %v4177_v5 = vld [vmem:[%s6481_s30 + $0xb0] sm:$0xff] }
  0x87   : > { %5239 = vmatprep.mubr.msk.bf16.mxu1 %vm435_vm0, %v872_v20  ;;  %5418 = vmatpush3.bf16.msra.mxu0 %v6112_v40  ;;  %v1246_v40 = vrot.slane %v1208_v60, 1  ;;  %v6944_v20 = vld [vmem:[#allocation9_spill] sm:$0xff]  ;;  %v6946_v60 = vrot.slane %v6220_v37, 1 }
  0x88   : > { %5389 = vmatprep.mubr.msk.bf16.mxu0 %vm435_vm0, %v6161_v17  ;;  %5451 = vmatprep.subr.bf16.mxu0 %v6432_v0  ;;  %v895_v17 = vrot.slane %v893_v33, 1  ;;  %v1627_v33 = vrot.slane %v1590_v12, 1 }
  0x89   : > { %v1248_v4 = vsel %vm1245_vm4, %v1246_v40, %v6939_v21  ;;  %v6569_v40 = vld [vmem:[#allocation2 + $0x20] sm:$0xff]  ;;  %v6947_v21 = vld [vmem:[#allocation11_spill] sm:$0xff] }
  0x8a   : > { %v896_v38 = vsel %vm764_vm2, %v891_v26, %v895_v17  ;;  %v6567_v17 = vld [vmem:[#allocation2 + $0x18] sm:$0xff]  ;;  %v1632_v15 = vrot.slane %v6569_v40, 1 }
  0x8b   : > { %v1630_v37 = vrot.slane %v6567_v17, 1 }
  0x8e   : > { %5240 = vmatmul.mubr.msk.bf16.gmra.mrb[24].mxu1 %vm435_vm0, %v880_v55  ;;  %5390 = vmatmul.mubr.msk.bf16.gmra.mrb[4].mxu0 %vm435_vm0, %v6166_v45  ;;  %v4158_v45 = vld [vmem:[%s6481_s30 + $0x18] sm:$0xff]  ;;  %v6945_v55 = vld [vmem:[#allocation10_spill] sm:$0xff] }
  0x8f   : > { %5243 = vmatprep.mubr.msk.bf16.mxu1 %vm435_vm0, %v888_v35  ;;  %5393 = vmatprep.mubr.msk.bf16.mxu0 %vm435_vm0, %v6241_v16  ;;  %v4156_v16 = vld [vmem:[%s6481_s30 + $0x8] sm:$0xff]  ;;  %v1628_v35 = vrot.slane %v1591_v53, 1  ;;  %v6637_v53 = vld [vmem:[#allocation2 + $0x58] sm:$0xff] }
  0x96   : > { %5244 = vmatmul.mubr.msk.bf16.gmra.mrb[28].mxu1 %vm435_vm0, %v896_v38  ;;  %5394 = vmatmul.mubr.msk.bf16.gmra.mrb[8].mxu0 %vm435_vm0, %v6250_v2  ;;  %v4159_v2 = vld [vmem:[%s6481_s30 + $0x20] sm:$0xff]  ;;  %v4181_v38 = vld [vmem:[%s6481_s30 + $0xd0] sm:$0xff] }
  0x97   : > { %5249 = vmatprep.mubr.msk.bf16.mxu1 %vm435_vm0, %v1248_v4  ;;  %5397 = vmatprep.mubr.msk.bf16.mxu0 %vm435_vm0, %v6284_v9  ;;  %v3218_v9 = vld [vmem:[#allocation2 + $0x10] sm:$0xfc]  ;;  %v4184_v4 = vld [vmem:[%s6481_s30 + $0xe8] sm:$0xff] }
  0x9e   : > { %5250 = vmatmul.mubr.msk.bf16.vlgmr.msra.gmra.mrb[0].mxu1 %vm435_vm0, %v6123_v49  ;;  %5398 = vmatmul.mubr.msk.bf16.gmra.mrb[12].mxu0 %vm435_vm0, %v6293_v22  ;;  %v4157_v49 = vld [vmem:[%s6481_s30 + $0x10] sm:$0xff]  ;;  %v4162_v22 = vld [vmem:[%s6481_s30 + $0x38] sm:$0xff] }
  0x9f   : > { %5253 = vmatprep.mubr.msk.bf16.mxu1 %vm435_vm0, %v6126_v58  ;;  %5401 = vmatprep.mubr.msk.bf16.mxu0 %vm435_vm0, %v6326_v39  ;;  %v4155_v58 = vld [vmem:[%s6481_s30] sm:$0xff] }
  0xa0   : > { %5282 = vmatpush3.bf16.msra.mxu1 %v6300_v41  ;;  %4199 = vperm.xlu1 %5753, %v4157_v49   ;;  %v3240_v41 = vshrl.u32 %v3218_v9, 16  ;;  %v4163_v39 = vld [vmem:[%s6481_s30 + $0x40] sm:$0xff] }
  0xa1   : > { %5485 = vmatprep.subr.bf16.mxu1 %v5840_v1  ;;  %4189 = vperm.xlu0 %5752, %v4155_v58   ;;  %v4160_v1 = vld [vmem:[%s6481_s30 + $0x28] sm:$0xff]  ;;  %v4183_v49 = vld [vmem:[%s6481_s30 + $0xe0] sm:$0xff]  ;;  %v1631_v58 = vsel %vm1245_vm4, %v1628_v35, %v1630_v37 }
  0xa2   : > { %v3242_v56 = vrot.slane %v3240_v41, 2 }
  0xa4   : > { %4204 = vperm.xlu1 %5753, %v4158_v45   ;;  %v4186_v45 = vld [vmem:[%s6481_s30 + $0xf8] sm:$0xff] }
  0xa5   : > { %4194 = vperm.xlu0 %5752, %v4156_v16   ;;  %v1633_v16 = vsel %vm1245_vm4, %v1630_v37, %v1632_v15  ;;  %v6655_v37 = vld [vmem:[#allocation2 + $0x70] sm:$0xff] }
  0xa6   : > { %5254 = vmatmul.mubr.msk.bf16.gmra.mrb[4].mxu1 %vm435_vm0, %v6133_v30  ;;  %5402 = vmatmul.mubr.msk.bf16.gmra.mrb[16].mxu0 %vm435_vm0, %v6336_v29  ;;  %v4161_v30 = vld [vmem:[%s6481_s30 + $0x30] sm:$0xff]  ;;  %v3243_v29 = vshll.u32 %v3218_v9, 16  ;;  %v5782_v9 = vld [vmem:[%s6887_s2 + $0x20] sm:$0xff]  }
  0xa7   : > { %5257 = vmatprep.mubr.msk.bf16.mxu1 %vm435_vm0, %v6136_v36  ;;  %5405 = vmatprep.mubr.msk.bf16.mxu0 %vm435_vm0, %v6359_v11  ;;  %v4164_v36 = vld [vmem:[%s6481_s30 + $0x48] sm:$0xff]  ;;  %v2853_v11 = vld [vmem:[#allocation2 + $0x90] sm:$0x3] }
  0xa8   : > { %4214 = vperm.xlu1 %5753, %v4160_v1   ;;  %v6585_v1 = vld [vmem:[#allocation2 + $0x28] sm:$0xff] }
  0xa9   : > { %4209 = vperm.xlu0 %5752, %v4159_v2   ;;  %v6587_v2 = vld [vmem:[#allocation2 + $0x30] sm:$0xff] }
  0xac   : > { %4224 = vperm.xlu1 %5753, %v4162_v22   ;;  %v4185_v22 = vld [vmem:[%s6481_s30 + $0xf0] sm:$0xff] }
  0xad   : > { %4219 = vperm.xlu0 %5752, %v4161_v30   ;;  %v6948_v30 = vld [vmem:[#allocation12_spill] sm:$0xff] }
  0xae   : > { %5258 = vmatmul.mubr.msk.bf16.gmra.mrb[8].mxu1 %vm435_vm0, %v6147_v8  ;;  %5406 = vmatmul.mubr.msk.bf16.gmra.mrb[20].mxu0 %vm435_vm0, %v6369_v46  ;;  %v4166_v8 = vld [vmem:[%s6481_s30 + $0x58] sm:$0xff]  ;;  %v3245_v46 = vrot.slane %v3243_v29, 3 }
  0xaf   : > { %5261 = vmatprep.mubr.msk.bf16.mxu1 %vm435_vm0, %v6154_v32  ;;  %5409 = vmatprep.mubr.msk.bf16.mxu0 %vm435_vm0, %v6389_v57  ;;  %v4168_v32 = vld [vmem:[%s6481_s30 + $0x68] sm:$0xff]  ;;  %v2905_v57 = vrot.slane %v2853_v11, 2 }
  0xb0   : > { %4234 = vperm.xlu1 %5753, %v4164_v36   ;;  %v3246_v34 = vor.u32 %v3245_v46, %v3242_v56  ;;  %v1636_v36 = vrot.slane %v6587_v2, 1  ;;  %v6950_v46 = vld [vmem:[#allocation5_spill] sm:$0xff] }
  0xb1   : > { %4229 = vperm.xlu0 %5752, %v4163_v39   ;;  %v6605_v39 = vld [vmem:[#allocation2 + $0x40] sm:$0xff] }
  0xb2   : > { %v1640_v56 = vrot.slane %v6605_v39, 1 }
  0xb4   : > { %4244 = vperm.xlu1 %5753, %v4166_v8   ;;  %v6949_v8 = vld [vmem:[#allocation13_spill] sm:$0xff] }
  0xb5   : > { %4239 = vperm.xlu0 %5752, %v4165_v19   ;;  %v3365_v19 = vshrl.u32 %v6950_v46, 16 }
  0xb6   : > { %5262 = vmatmul.mubr.msk.bf16.gmra.mrb[12].mxu1 %vm435_vm0, %v6157_v47  ;;  %5410 = vmatmul.mubr.msk.bf16.gmra.mrb[24].mxu0 %vm435_vm0, %v6395_v44  ;;  %v4170_v47 = vld [vmem:[%s6481_s30 + $0x78] sm:$0xff]  ;;  %v2906_v44 = vsel %vm2492_vm3, %v6940_v61, %v2905_v57  ;;  %v3374_v57 = vshrl.u32 %v6116_v48, 16 }
  0xb7   : > { %5265 = vmatprep.mubr.msk.bf16.mxu1 %vm435_vm0, %v6175_v59  ;;  %5413 = vmatprep.mubr.msk.bf16.mxu0 %vm435_vm0, %v6172_v52  ;;  %v3255_v59 = vsel %vm3238_vm5, %v3246_v34, %v6190_v14  ;;  %v6941_v52 = vld [vmem:[#allocation6_spill] sm:$0xff]  ;;  %v4174_v14 = vld [vmem:[%s6481_s30 + $0x98] sm:$0xff]  ;;  %v3377_v34 = vshll.u32 %v6116_v48, 16  ;;  %v3367_v61 = vrot.slane %v3365_v19, 2 }
  0xb8   : > { %4254 = vperm.xlu1 %5753, %v4168_v32   ;;  %v3368_v32 = vshll.u32 %v6950_v46, 16 }
  0xb9   : > { %4249 = vperm.xlu0 %5752, %v4167_v7  }
  0xbc   : > { %4264 = vperm.xlu1 %5753, %v4170_v47  }
  0xbd   : > { %4259 = vperm.xlu0 %5752, %v4169_v24   ;;  %v3376_v24 = vrot.slane %v3374_v57, 2 }
  0xbe   : > { %5266 = vmatmul.mubr.msk.bf16.gmra.mrb[16].mxu1 %vm435_vm0, %v6181_v10  ;;  %5414 = vmatmul.mubr.msk.bf16.gmra.mrb[28].mxu0 %vm435_vm0, %v2906_v44  ;;  %v4173_v10 = vld [vmem:[%s6481_s30 + $0x90] sm:$0xff]  ;;  %v3370_v44 = vrot.slane %v3368_v32, 3 }
  0xbf   : > { %5269 = vmatprep.mubr.msk.bf16.mxu1 %vm435_vm0, %v6941_v52  ;;  %5419 = vmatprep.mubr.msk.bf16.mxu0 %vm435_vm0, %v3255_v59  ;;  %v6621_v59 = vld [vmem:[#allocation2 + $0x48] sm:$0xff]  ;;  %v6623_v52 = vld [vmem:[#allocation2 + $0x50] sm:$0xff] }
  0xc0   : > { %4274 = vperm.xlu1 %5753, %v4172_v6   ;;  %v3234_v6 = vld [vmem:[#allocation2 + $0x90] sm:$0x7]  ;;  %v1642_v48 = vrot.slane %v6621_v59, 1 }
  0xc1   : > { %4269 = vperm.xlu0 %5752, %v4171_v62   ;;  %v6951_v62 = vld [vmem:[#allocation15_spill] sm:$0xff] }
  0xc4   : > { %4284 = vperm.xlu1 %5753, %v4174_v14   ;;  %v3371_v14 = vor.u32 %v3370_v44, %v3367_v61  ;;  %v3753_v44 = vrot.slane %v6621_v59, 3 }
  0xc5   : > { %4279 = vperm.xlu0 %5752, %v4173_v10   ;;  %v3383_v10 = vshrl.u32 %v3234_v6, 16 }
  0xc6   : > { %5270 = vmatmul.mubr.msk.bf16.gmra.mrb[20].mxu1 %vm435_vm0, %v6942_v42  ;;  %5420 = vmatmul.mubr.msk.bf16.vlgmr.msra.gmra.mrb[0].mxu0 %vm435_vm0, %v6943_v3  ;;  %v1644_v42 = vrot.slane %v6623_v52, 1  ;;  %v3386_v3 = vshll.u32 %v3234_v6, 16 }
  0xc7   : > { %5273 = vmatprep.mubr.msk.bf16.mxu1 %vm435_vm0, %v6944_v20  ;;  %5452 = vmatpush3.bf16.msra.mxu0 %v6432_v0  ;;  %v4180_v0 = vld [vmem:[%s6481_s30 + $0xc8] sm:$0xff] }
  0xc8   : > { %5423 = vmatprep.mubr.msk.bf16.mxu0 %vm435_vm0, %v6226_v28  ;;  %4294 = vperm.xlu1 %5753, %v4176_v31   ;;  %v1277_v28 = vrot.slane %v1224_v54, 1  ;;  %v1643_v31 = vsel %vm1245_vm4, %v1640_v56, %v1642_v48  ;;  %v3385_v54 = vrot.slane %v3383_v10, 2  ;;  %v3388_v12 = vrot.slane %v3386_v3, 3 }
  0xc9   : > { %4289 = vperm.xlu0 %5752, %v4175_v13   ;;  %v6952_v13 = vld [vmem:[#allocation14_spill] sm:$0xff] }
  0xca   : > { %v1278_v26 = vsel %vm1245_vm4, %v6946_v60, %v1277_v28  ;;  %v6640_v28 = vld [vmem:[#allocation2 + $0x60] sm:$0xff]  ;;  %v3741_v60 = vrot.slane %v6567_v17, 3 }
  0xcb   : > { %v2094_v61 = vshll.u32 %v6640_v28, 16 }
  0xcc   : > { %4304 = vperm.xlu1 %5753, %v4178_v25   ;;  %v3372_v25 = vsel %vm3238_vm5, %v6952_v13, %v3371_v14 }
  0xcd   : > { %4299 = vperm.xlu0 %5752, %v4177_v5   ;;  %v2096_v10 = vrot.slane %v2094_v61, 2  ;;  %v3718_v61 = vld [vmem:[#allocation2 + $0x90] sm:$0x7] }
  0xce   : > { %5274 = vmatmul.mubr.msk.bf16.gmra.mrb[24].mxu1 %vm435_vm0, %v6229_v23  ;;  %5424 = vmatmul.mubr.msk.bf16.gmra.mrb[4].mxu0 %vm435_vm0, %v6235_v63  ;;  %v4179_v23 = vld [vmem:[%s6481_s30 + $0xc0] sm:$0xff]  ;;  %v4182_v63 = vld [vmem:[%s6481_s30 + $0xd8] sm:$0xff] }
  0xcf   : > { %5277 = vmatprep.mubr.msk.bf16.mxu1 %vm435_vm0, %v6247_v43  ;;  %5427 = vmatprep.mubr.msk.bf16.mxu0 %vm435_vm0, %v6945_v55  ;;  %v1629_v43 = vsel %vm1245_vm4, %v1627_v33, %v1628_v35  ;;  %v1646_v55 = vrot.slane %v6637_v53, 1  ;;  %v3389_v33 = vor.u32 %v3388_v12, %v3385_v54  ;;  %v1648_v35 = vrot.slane %v6640_v28, 1 }
  0xd0   : > { %4314 = vperm.xlu1 %5753, %v4180_v0   ;;  %v3702_v0 = vld [vmem:[#allocation2 + $0x10] sm:$0xf8]  ;;  %v3757_v54 = vrot.slane %v6637_v53, 3 }
  0xd1   : > { %4309 = vperm.xlu0 %5752, %v4179_v23   ;;  %v3740_v23 = vrot.slane %v3702_v0, 3 }
  0xd4   : > { %4324 = vperm.xlu1 %5753, %v4182_v63  }
  0xd5   : > { %4319 = vperm.xlu0 %5752, %v4181_v38   ;;  %v6652_v38 = vld [vmem:[#allocation2 + $0x68] sm:$0xff] }
  0xd6   : > { %5278 = vmatmul.mubr.msk.bf16.gmra.mrb[28].mxu1 %vm435_vm0, %v1278_v26  ;;  %5428 = vmatmul.mubr.msk.bf16.gmra.mrb[8].mxu0 %vm435_vm0, %v6947_v21  ;;  %v1647_v26 = vsel %vm1245_vm4, %v1644_v42, %v1646_v55  ;;  %v3742_v21 = vsel %vm3739_vm6, %v3740_v23, %v3741_v60  ;;  %v1650_v17 = vrot.slane %v6652_v38, 1  ;;  %v2100_v3 = vshrl.u32 %v6652_v38, 16 }
  0xd7   : > { %5283 = vmatprep.mubr.msk.bf16.mxu1 %vm435_vm0, %v1629_v43  ;;  %5431 = vmatprep.mubr.msk.bf16.mxu0 %vm435_vm0, %v6281_v27  ;;  %v1634_v27 = vrot.slane %v6585_v1, 1  ;;  %v1649_v43 = vsel %vm1245_vm4, %v1646_v55, %v1648_v35 }
  0xd8   : > { %4334 = vperm.xlu1 %5753, %v4184_v4   ;;  %v3743_v4 = vrot.slane %v6569_v40, 3 }
  0xd9   : > { %4329 = vperm.xlu0 %5752, %v4183_v49   ;;  %v1635_v41 = vsel %vm1245_vm4, %v1632_v15, %v1634_v27  ;;  %v1637_v29 = vsel %vm1245_vm4, %v1634_v27, %v1636_v36  ;;  %v1652_v15 = vrot.slane %v6655_v37, 1  ;;  %v3745_v49 = vrot.slane %v6585_v1, 3 }
  0xda   : > { %v3747_v1 = vrot.slane %v6587_v2, 3 }
  0xdb   : > { %v3746_v27 = vsel %vm3739_vm6, %v3743_v4, %v3745_v49 }
  0xdc   : > { %4344 = vperm.xlu1 %5753, %v4186_v45   ;;  %v3744_v45 = vsel %vm3739_vm6, %v3741_v60, %v3743_v4 }
  0xdd   : > { %4339 = vperm.xlu0 %5752, %v4185_v22   ;;  %v6668_v22 = vld [vmem:[#allocation2 + $0x78] sm:$0xff] }
  0xde   : > { %5284 = vmatmul.mubr.msk.bf16.vlgmr.msra.gmra.mrb[0].mxu1 %vm435_vm0, %v1631_v58  ;;  %5432 = vmatmul.mubr.msk.bf16.gmra.mrb[12].mxu0 %vm435_vm0, %v6290_v51  ;;  %v6603_v51 = vld [vmem:[#allocation2 + $0x38] sm:$0xff]  ;;  %v1651_v58 = vsel %vm1245_vm4, %v1648_v35, %v1650_v17  ;;  %v1654_v40 = vrot.slane %v6668_v22, 1 }
  0xdf   : > { %5287 = vmatprep.mubr.msk.bf16.mxu1 %vm435_vm0, %v1633_v16  ;;  %5435 = vmatprep.mubr.msk.bf16.mxu0 %vm435_vm0, %v6948_v30  ;;  %v1638_v11 = vrot.slane %v6603_v51, 1  ;;  %v1653_v16 = vsel %vm1245_vm4, %v1650_v17, %v1652_v15  ;;  %v1656_v30 = vrot.slane %v6950_v46, 1  ;;  %v2085_v46 = vshll.u32 %v6637_v53, 16 }
  0xe0   : > { %5486 = vmatpush3.bf16.msra.mxu1 %v5782_v9  ;;  %v2073_v9 = vshrl.u32 %v6623_v52, 16 }
  0xe1   : > { %v1639_v7 = vsel %vm1245_vm4, %v1636_v36, %v1638_v11  ;;  %v1641_v47 = vsel %vm1245_vm4, %v1638_v11, %v1640_v56  ;;  %v2076_v36 = vshll.u32 %v6623_v52, 16  ;;  %v1657_v11 = vsel %vm1245_vm4, %v1654_v40, %v1656_v30  ;;  %v1606_v56 = vld [vmem:[#allocation2 + $0x88] sm:$0x1] }
  0xe2   : > { %v2075_v19 = vrot.slane %v2073_v9, 1  ;;  %v1658_v2 = vrot.slane %v1606_v56, 1  ;;  %v2087_v6 = vrot.slane %v2085_v46, 2 }
  0xe3   : > { %v2078_v32 = vrot.slane %v2076_v36, 2 }
  0xe6   : > { %5288 = vmatmul.mubr.msk.bf16.gmra.mrb[4].mxu1 %vm435_vm0, %v1635_v41  ;;  %5436 = vmatmul.mubr.msk.bf16.gmra.mrb[16].mxu0 %vm435_vm0, %v6949_v8  ;;  %v3749_v41 = vrot.slane %v6603_v51, 3  ;;  %v3748_v8 = vsel %vm3739_vm6, %v3745_v49, %v3747_v1  ;;  %v2082_v51 = vshrl.u32 %v6637_v53, 16 }
  0xe7   : > { %5291 = vmatprep.mubr.msk.bf16.mxu1 %vm435_vm0, %v1637_v29  ;;  %5439 = vmatprep.mubr.msk.bf16.mxu0 %vm435_vm0, %v6356_v50  ;;  %v3379_v50 = vrot.slane %v3377_v34, 3  ;;  %v1655_v29 = vsel %vm1245_vm4, %v1652_v15, %v1654_v40  ;;  %v3751_v34 = vrot.slane %v6605_v39, 3  ;;  %v3761_v15 = vrot.slane %v6652_v38, 3 }
  0xe8   : > { %v3750_v57 = vsel %vm3739_vm6, %v3747_v1, %v3749_v41 }
  0xe9   : > { %v3380_v20 = vor.u32 %v3379_v50, %v3376_v24  ;;  %v1659_v24 = vsel %vm1245_vm4, %v1656_v30, %v1658_v2  ;;  %v2084_v50 = vrot.slane %v2082_v51, 1  ;;  %v3754_v39 = vsel %vm3739_vm6, %v3751_v34, %v3753_v44  ;;  %v1987_v30 = vld [vmem:[#allocation2 + $0x88] sm:$0x3] }
  0xea   : > { %v2139_v36 = vshll.u32 %v1987_v30, 16  ;;  %v5783_v51 = vld [vmem:[#allocation2 + $0x88] sm:$0xff] }
  0xeb   : > { %v3381_v5 = vsel %vm3238_vm5, %v3371_v14, %v3380_v20  ;;  %v3390_v63 = vsel %vm3238_vm5, %v3380_v20, %v3389_v33  ;;  %v2088_v59 = vor.u32 %v2087_v6, %v2084_v50  ;;  %v2103_v20 = vshll.u32 %v6652_v38, 16 }
  0xec   : > { %v2136_v38 = vshrl.u32 %v1987_v30, 16  ;;  %v3769_v46 = vrot.slane %v5783_v51, 3 }
  0xed   : > { %v2105_v0 = vrot.slane %v2103_v20, 2 }
  0xee   : > { %5292 = vmatmul.mubr.msk.bf16.gmra.mrb[8].mxu1 %vm435_vm0, %v1639_v7  ;;  %5440 = vmatmul.mubr.msk.bf16.gmra.mrb[20].mxu0 %vm435_vm0, %v6366_v18  ;;  %v1645_v18 = vsel %vm1245_vm4, %v1642_v48, %v1644_v42  ;;  %v2079_v7 = vor.u32 %v2078_v32, %v2075_v19  ;;  %v3752_v48 = vsel %vm3739_vm6, %v3749_v41, %v3751_v34  ;;  %v3763_v41 = vrot.slane %v6655_v37, 3 }
  0xef   : > { %5295 = vmatprep.mubr.msk.bf16.mxu1 %vm435_vm0, %v1641_v47  ;;  %5443 = vmatprep.mubr.msk.bf16.mxu0 %vm435_vm0, %v6951_v62  ;;  %v2091_v47 = vshrl.u32 %v6640_v28, 16  ;;  %v6953_v62 = vld [vmem:[#allocation4_spill] sm:$0xff]  ;;  %v2138_v56 = vrot.slane %v2136_v38, 1  ;;  %v2141_v19 = vrot.slane %v2139_v36, 2 }
  0xf0   : > { %v2080_v14 = vsel %vm1991_vm1, %v6953_v62, %v2079_v7  ;;  %v2089_v12 = vsel %vm1991_vm1, %v2079_v7, %v2088_v59  ;;  %v3764_v32 = vsel %vm3739_vm6, %v3761_v15, %v3763_v41 }
  0xf1   : > { %v2093_v42 = vrot.slane %v2091_v47, 1 }
  0xf3   : > { %v2097_v13 = vor.u32 %v2096_v10, %v2093_v42 }
  0xf5   : > { %v2098_v33 = vsel %vm1991_vm1, %v2088_v59, %v2097_v13 }
  0xf6   : > { %5296 = vmatmul.mubr.msk.bf16.gmra.mrb[12].mxu1 %vm435_vm0, %v1643_v31  ;;  %5444 = vmatmul.mubr.msk.bf16.gmra.mrb[24].mxu0 %vm435_vm0, %v3372_v25  ;;  %v3755_v31 = vrot.slane %v6623_v52, 3  ;;  %v2109_v25 = vshrl.u32 %v6655_v37, 16  ;;  %v1986_v52 = vld [vmem:[#allocation2 + $0x80] sm:$0xff] }
  0xf7   : > { %5299 = vmatprep.mubr.msk.bf16.mxu1 %vm435_vm0, %v1645_v18  ;;  %5447 = vmatprep.mubr.msk.bf16.mxu0 %vm435_vm0, %v3381_v5  ;;  %v2112_v18 = vshll.u32 %v6655_v37, 16  ;;  %v2102_v5 = vrot.slane %v2100_v3, 1  ;;  %v2127_v17 = vshrl.u32 %v1986_v52, 16  ;;  %v2130_v4 = vshll.u32 %v1986_v52, 16 }
  0xf8   : > { %v3756_v55 = vsel %vm3739_vm6, %v3753_v44, %v3755_v31  ;;  %v2111_v35 = vrot.slane %v2109_v25, 1  ;;  %v3758_v60 = vsel %vm3739_vm6, %v3755_v31, %v3757_v54  ;;  %v2142_v37 = vor.u32 %v2141_v19, %v2138_v56 }
  0xf9   : > { %v2114_v23 = vrot.slane %v2112_v18, 2  ;;  %v2106_v53 = vor.u32 %v2105_v0, %v2102_v5  ;;  %v2129_v40 = vrot.slane %v2127_v17, 1  ;;  %v2132_v1 = vrot.slane %v2130_v4, 2  ;;  %v6781_v4 = vld [vmem:[%s6888_s3] ss:$0 sm:$0xff] }
  0xfa   : > { %v3771_v44 = vrot.slane %v3718_v61, 3 }
  0xfb   : > { %v2107_v49 = vsel %vm1991_vm1, %v2097_v13, %v2106_v53 }
  0xfe   : > { %5300 = vmatmul.mubr.msk.bf16.gmra.mrb[16].mxu1 %vm435_vm0, %v1647_v26  ;;  %5448 = vmatmul.mubr.msk.bf16.gmra.mrb[28].mxu0 %vm435_vm0, %v3390_v63  ;;  %v2118_v26 = vshrl.u32 %v6668_v22, 16  ;;  %v2121_v63 = vshll.u32 %v6668_v22, 16 }
  0xff   : > { %5303 = vmatprep.mubr.msk.bf16.mxu1 %vm435_vm0, %v1649_v43  ;;  %5453 = vmatprep.mubr.msk.bf16.mxu0 %vm435_vm0, %v3742_v21  ;;  %v3759_v43 = vrot.slane %v6640_v28, 3  ;;  %v2115_v21 = vor.u32 %v2114_v23, %v2111_v35 }
 0x101   : > { %v3762_v9 = vsel %vm3739_vm6, %v3759_v43, %v3761_v15 }
 0x106   : > { %5304 = vmatmul.mubr.msk.bf16.gmra.mrb[20].mxu1 %vm435_vm0, %v1651_v58  ;;  %5454 = vmatmul.mubr.msk.bf16.vlgmr.msra.gmra.mrb[0].mxu0 %vm435_vm0, %v3744_v45  ;;  %v2120_v58 = vrot.slane %v2118_v26, 1  ;;  %v2123_v45 = vrot.slane %v2121_v63, 2 }
 0x107   : > { %5307 = vmatprep.mubr.msk.bf16.mxu1 %vm435_vm0, %v1653_v16  ;;  %5457 = vmatprep.mubr.msk.bf16.mxu0 %vm435_vm0, %v3746_v27  ;;  %v3760_v16 = vsel %vm3739_vm6, %v3757_v54, %v3759_v43  ;;  %v2116_v27 = vsel %vm1991_vm1, %v2106_v53, %v2115_v21 }
 0x108   : > { %v2124_v28 = vor.u32 %v2123_v45, %v2120_v58 }
 0x10e   : > { %5308 = vmatmul.mubr.msk.bf16.gmra.mrb[24].mxu1 %vm435_vm0, %v1655_v29  ;;  %5458 = vmatmul.mubr.msk.bf16.gmra.mrb[4].mxu0 %vm435_vm0, %v3748_v8  ;;  %v2133_v29 = vor.u32 %v2132_v1, %v2129_v40  ;;  %v3765_v8 = vrot.slane %v6668_v22, 3  ;;  %v3767_v22 = vrot.slane %v1986_v52, 3 }
 0x10f   : > { %5311 = vmatprep.mubr.msk.bf16.mxu1 %vm435_vm0, %v1657_v11  ;;  %5461 = vmatprep.mubr.msk.bf16.mxu0 %vm435_vm0, %v3750_v57  ;;  %v2125_v11 = vsel %vm1991_vm1, %v2115_v21, %v2124_v28 }
 0x110   : > { %v2134_v57 = vsel %vm1991_vm1, %v2124_v28, %v2133_v29  ;;  %v3766_v2 = vsel %vm3739_vm6, %v3763_v41, %v3765_v8  ;;  %v2143_v34 = vsel %vm1991_vm1, %v2133_v29, %v2142_v37  ;;  %v3768_v7 = vsel %vm3739_vm6, %v3765_v8, %v3767_v22 }
 0x111   : > { %v3770_v47 = vsel %vm3739_vm6, %v3767_v22, %v3769_v46 }
 0x116   : > { %5312 = vmatmul.mubr.msk.bf16.gmra.mrb[28].mxu1 %vm435_vm0, %v1659_v24  ;;  %5462 = vmatmul.mubr.msk.bf16.gmra.mrb[8].mxu0 %vm435_vm0, %v3752_v48  ;;  %v3772_v24 = vsel %vm3739_vm6, %v3769_v46, %v3771_v44 }
 0x117   : > { %5333 = vmatprep.mubr.msk.bf16.mxu1 %vm435_vm0, %v2080_v14  ;;  %5465 = vmatprep.mubr.msk.bf16.mxu0 %vm435_vm0, %v3754_v39 }
 0x11e   : > { %5334 = vmatmul.mubr.msk.bf16.vlgmr.msra.gmra.mrb[16].mxu1 %vm435_vm0, %v2089_v12  ;;  %5466 = vmatmul.mubr.msk.bf16.gmra.mrb[12].mxu0 %vm435_vm0, %v3756_v55 }
 0x11f   : > { %5337 = vmatprep.mubr.msk.bf16.mxu1 %vm435_vm0, %v2098_v33  ;;  %5469 = vmatprep.mubr.msk.bf16.mxu0 %vm435_vm0, %v3758_v60  ;;  %v4200_v62 = vpop.permute.xlu1 %4199 }
 0x120   : > { %v4190_v42 = vpop.permute.xlu0 %4189 }
 0x123   : > { %v4205_v39 = vpop.permute.xlu1 %4204 }
 0x124   : > { %v4195_v3 = vpop.permute.xlu0 %4194 }
 0x126   : > { %5338 = vmatmul.mubr.msk.bf16.gmra.mrb[20].mxu1 %vm435_vm0, %v2107_v49  ;;  %5470 = vmatmul.mubr.msk.bf16.gmra.mrb[16].mxu0 %vm435_vm0, %v3760_v16 }
 0x127   : > { %5341 = vmatprep.mubr.msk.bf16.mxu1 %vm435_vm0, %v2116_v27  ;;  %5473 = vmatprep.mubr.msk.bf16.mxu0 %vm435_vm0, %v3762_v9  ;;  %v6748_v13 = vpop.permute.xlu1 %4214 }
 0x128   : > { %v4210_v25 = vpop.permute.xlu0 %4209 }
 0x12b   : > { %v4225_v0 = vpop.permute.xlu1 %4224 }
 0x12c   : > { %v4220_v55 = vpop.permute.xlu0 %4219 }
 0x12e   : > { %5342 = vmatmul.mubr.msk.bf16.gmra.mrb[24].mxu1 %vm435_vm0, %v2125_v11  ;;  %5474 = vmatmul.mubr.msk.bf16.gmra.mrb[20].mxu0 %vm435_vm0, %v3764_v32 }
 0x12f   : > { %5345 = vmatprep.mubr.msk.bf16.mxu1 %vm435_vm0, %v2134_v57  ;;  %5477 = vmatprep.mubr.msk.bf16.mxu0 %vm435_vm0, %v3766_v2  ;;  %v6764_v60 = vpop.permute.xlu1 %4234 }
 0x130   : > { %v6768_v53 = vpop.permute.xlu0 %4229 }
 0x133   : > { %v6770_v26 = vpop.permute.xlu1 %4244 }
 0x134   : > { %v6772_v63 = vpop.permute.xlu0 %4239 }
 0x136   : > { %5346 = vmatmul.mubr.msk.bf16.gmra.mrb[28].mxu1 %vm435_vm0, %v2143_v34  ;;  %5478 = vmatmul.mubr.msk.bf16.gmra.mrb[24].mxu0 %vm435_vm0, %v3768_v7 }
 0x137   : > { %5481 = vmatprep.mubr.msk.bf16.mxu0 %vm435_vm0, %v3770_v47  ;;  %v6774_v43 = vpop.permute.xlu1 %4254 }
 0x138   : > { %v6776_v21 = vpop.permute.xlu0 %4249 }
 0x13b   : > { %v6784_v1 = vpop.permute.xlu1 %4264 }
 0x13c   : > { %v6787_v28 = vpop.permute.xlu0 %4259 }
 0x13e   : > { %5482 = vmatmul.mubr.msk.bf16.gmra.mrb[28].mxu0 %vm435_vm0, %v3772_v24 }
 0x13f   : > { %v6792_v37 = vpop.permute.xlu1 %4274 }
 0x140   : > { %v6799_v7 = vpop.permute.xlu0 %4269 }
 0x1b1   : > { %v5285_v50 = vpop.f32.mrb[0].mxu1 }
 0x1b2   : > { %v1748_v6 = vpop.f32.mrb[1].mxu1 }
 0x1b3   : > { %v5286_v48 = vpop.f32.mrb[2].mxu1 }
 0x1b4   : > { %v1751_v14 = vpop.f32.mrb[3].mxu1 }
 0x1b9   : > { %v5289_v10 = vpop.f32.mrb[4].mxu1 }
 0x1ba   : > { %v1764_v59 = vpop.f32.mrb[5].mxu1 }
 0x1bb   : > { %v5290_v20 = vpop.f32.mrb[6].mxu1 }
 0x1bc   : > { %v1767_v31 = vpop.f32.mrb[7].mxu1 }
 0x1c1   : > { %v6750_v18 = vpop.f32.mrb[8].mxu1 }
 0x1c2   : > { %v6752_v54 = vpop.f32.mrb[9].mxu1 }
 0x1c3   : > { %v6754_v12 = vpop.f32.mrb[10].mxu1 }
 0x1c4   : > { %v6756_v5 = vpop.f32.mrb[11].mxu1 }
 0x1c9   : > { %v6758_v33 = vpop.f32.mrb[12].mxu1 }
 0x1ca   : > { %v6760_v35 = vpop.f32.mrb[13].mxu1 }
 0x1cb   : > { %v6762_v23 = vpop.f32.mrb[14].mxu1 }
 0x1cc   : > { %v6766_v52 = vpop.f32.mrb[15].mxu1 }
 0x1d9   : > { %v5455_v17 = vpop.f32.mrb[0].mxu0 }
 0x1da   : > { %v5487_v15 = vadd.f32 %v5455_v17, %v5285_v50  ;;  %v3861_v49 = vpop.f32.mrb[1].mxu0 }
 0x1db   : > { %v5488_v58 = vadd.f32 %v3861_v49, %v1748_v6  ;;  %v5456_v45 = vpop.f32.mrb[2].mxu0 }
 0x1dc   : > { %v4125_v16 = vmul.f32 %v5487_v15, %v6781_v4  ;;  %v5489_v27 = vadd.f32 %v5456_v45, %v5286_v48  ;;  %v3864_v40 = vpop.f32.mrb[3].mxu0 }
 0x1dd   : > { %v4123_v30 = vmul.f32 %v5488_v58, %v6781_v4  ;;  %v5490_v9 = vadd.f32 %v3864_v40, %v1751_v14 }
 0x1de   : > { %v4349_v38 = vmul.f32 %v4200_v62, %v4125_v16  ;;  %v4126_v36 = vmul.f32 %v5489_v27, %v6781_v4 }
 0x1df   : > { %v4347_v41 = vmul.f32 %v4190_v42, %v4123_v30  ;;  %v4124_v29 = vmul.f32 %v5490_v9, %v6781_v4 }
 0x1e0   : > { %v4350_v8 = vmul.f32 %v4205_v39, %v4126_v36  ;;  %v4381_v19 = vmax.f32 %v4349_v38, 0.0 }
 0x1e1   : > { %v4348_v11 = vmul.f32 %v4195_v3, %v4124_v29  ;;  %v5459_v56 = vpop.f32.mrb[4].mxu0  ;;  %v4379_v22 = vmax.f32 %v4347_v41, 0.0 }
 0x1e2   : > { %v4382_v32 = vmax.f32 %v4350_v8, 0.0  ;;  %v5491_v57 = vadd.f32 %v5459_v56, %v5289_v10  ;;  %v3877_v2 = vpop.f32.mrb[5].mxu0 }
 0x1e3   : > { %v4380_v51 = vmax.f32 %v4348_v11, 0.0  ;;  %v5492_v46 = vadd.f32 %v3877_v2, %v1764_v59  ;;  %v5460_v34 = vpop.f32.mrb[6].mxu0  ;;  %v6807_v59 = vpop.permute.xlu1 %4284 }
 0x1e4   : > { %v4937_v47 = vpack.c.bf16 %v4382_v32, %v4381_v19  ;;  %v4129_v61 = vmul.f32 %v5491_v57, %v6781_v4  ;;  %v5493_v44 = vadd.f32 %v5460_v34, %v5290_v20  ;;  %v3880_v24 = vpop.f32.mrb[7].mxu0  ;;  %v6810_v20 = vpop.permute.xlu0 %4279 }
 0x1e5   : > { %v4932_v50 = vpack.c.bf16 %v4380_v51, %v4379_v22  ;;  %v4127_v6 = vmul.f32 %v5492_v46, %v6781_v4  ;;  %v5494_v48 = vadd.f32 %v3880_v24, %v1767_v31 }
 0x1e6   : > { %5011 = vst [vmem:[%s6797_s13 + $0x8] sm:$0xff] %v4937_v47   ;;  %v4353_v62 = vmul.f32 %v4220_v55, %v4129_v61  ;;  %v4130_v14 = vmul.f32 %v5493_v44, %v6781_v4 }
 0x1e7   : > { %4933 = vst [vmem:[%s6797_s13] sm:$0xff] %v4932_v50   ;;  %v4351_v42 = vmul.f32 %v4210_v25, %v4127_v6  ;;  %v4128_v10 = vmul.f32 %v5494_v48, %v6781_v4  ;;  %v6821_v41 = vpop.permute.xlu1 %4294 }
 0x1e8   : > { %v4354_v39 = vmul.f32 %v4225_v0, %v4130_v14  ;;  %v4385_v15 = vmax.f32 %v4353_v62, 0.0  ;;  %v6826_v8 = vpop.permute.xlu0 %4289 }
 0x1e9   : > { %v4352_v3 = vmul.f32 %v6748_v13, %v4128_v10  ;;  %v5463_v17 = vpop.f32.mrb[8].mxu0  ;;  %v4383_v58 = vmax.f32 %v4351_v42, 0.0 }
 0x1ea   : > { %v4386_v49 = vmax.f32 %v4354_v39, 0.0  ;;  %v5495_v31 = vadd.f32 %v5463_v17, %v6750_v18  ;;  %v3893_v55 = vpop.f32.mrb[9].mxu0 }
 0x1eb   : > { %v4384_v45 = vmax.f32 %v4352_v3, 0.0  ;;  %v5496_v25 = vadd.f32 %v3893_v55, %v6752_v54  ;;  %v5464_v16 = vpop.f32.mrb[10].mxu0  ;;  %v6839_v62 = vpop.permute.xlu1 %4304 }
 0x1ec   : > { %v4947_v0 = vpack.c.bf16 %v4386_v49, %v4385_v15  ;;  %v4133_v27 = vmul.f32 %v5495_v31, %v6781_v4  ;;  %v5497_v13 = vadd.f32 %v5464_v16, %v6754_v12  ;;  %v3896_v40 = vpop.f32.mrb[11].mxu0  ;;  %v4300_v42 = vpop.permute.xlu0 %4299 }
 0x1ed   : > { %v4942_v30 = vpack.c.bf16 %v4384_v45, %v4383_v58  ;;  %v4131_v9 = vmul.f32 %v5496_v25, %v6781_v4  ;;  %v5498_v38 = vadd.f32 %v3896_v40, %v6756_v5 }
 0x1ee   : > { %5013 = vst [vmem:[%s6797_s13 + $0x18] sm:$0xff] %v4947_v0   ;;  %v4357_v18 = vmul.f32 %v6772_v63, %v4133_v27  ;;  %v4134_v36 = vmul.f32 %v5497_v13, %v6781_v4 }
 0x1ef   : > { %5012 = vst [vmem:[%s6797_s13 + $0x10] sm:$0xff] %v4942_v30   ;;  %v4355_v54 = vmul.f32 %v6768_v53, %v4131_v9  ;;  %v4132_v29 = vmul.f32 %v5498_v38, %v6781_v4  ;;  %v6851_v38 = vpop.permute.xlu1 %4314 }
 0x1f0   : > { %v4358_v12 = vmul.f32 %v6770_v26, %v4134_v36  ;;  %v4389_v32 = vmax.f32 %v4357_v18, 0.0 }
 0x1f1   : > { %v5335_v11 = vpop.f32.mrb[16].mxu1  ;;  %v4356_v56 = vmul.f32 %v6764_v60, %v4132_v29  ;;  %v5467_v5 = vpop.f32.mrb[12].mxu0  ;;  %v4387_v51 = vmax.f32 %v4355_v54, 0.0 }
 0x1f2   : > { %v2296_v19 = vpop.f32.mrb[17].mxu1  ;;  %v4390_v63 = vmax.f32 %v4358_v12, 0.0  ;;  %v5499_v57 = vadd.f32 %v5467_v5, %v6758_v33  ;;  %v3909_v2 = vpop.f32.mrb[13].mxu0 }
 0x1f3   : > { %v5336_v22 = vpop.f32.mrb[18].mxu1  ;;  %v4388_v53 = vmax.f32 %v4356_v56, 0.0  ;;  %v5500_v46 = vadd.f32 %v3909_v2, %v6760_v35  ;;  %v5468_v34 = vpop.f32.mrb[14].mxu0 }
 0x1f4   : > { %v2299_v47 = vpop.f32.mrb[19].mxu1  ;;  %v4957_v26 = vpack.c.bf16 %v4390_v63, %v4389_v32  ;;  %v4137_v61 = vmul.f32 %v5499_v57, %v6781_v4  ;;  %v5501_v60 = vadd.f32 %v5468_v34, %v6762_v23  ;;  %v3912_v44 = vpop.f32.mrb[15].mxu0 }
 0x1f5   : > { %v4952_v24 = vpack.c.bf16 %v4388_v53, %v4387_v51  ;;  %v4135_v50 = vmul.f32 %v5500_v46, %v6781_v4  ;;  %v5502_v33 = vadd.f32 %v3912_v44, %v6766_v52  ;;  %v4310_v54 = vpop.permute.xlu0 %4309 }
 0x1f6   : > { %5015 = vst [vmem:[%s6797_s13 + $0x28] sm:$0xff] %v4957_v26   ;;  %v4361_v6 = vmul.f32 %v6787_v28, %v4137_v61  ;;  %v4138_v48 = vmul.f32 %v5501_v60, %v6781_v4 }
 0x1f7   : > { %5014 = vst [vmem:[%s6797_s13 + $0x20] sm:$0xff] %v4952_v24   ;;  %v4359_v35 = vmul.f32 %v6776_v21, %v4135_v50  ;;  %v4136_v14 = vmul.f32 %v5502_v33, %v6781_v4  ;;  %v4325_v24 = vpop.permute.xlu1 %4324 }
 0x1f8   : > { %v4362_v23 = vmul.f32 %v6784_v1, %v4138_v48  ;;  %v4393_v17 = vmax.f32 %v4361_v6, 0.0 }
 0x1f9   : > { %v5339_v10 = vpop.f32.mrb[20].mxu1  ;;  %v4360_v39 = vmul.f32 %v6774_v43, %v4136_v14  ;;  %v5471_v3 = vpop.f32.mrb[16].mxu0  ;;  %v4391_v55 = vmax.f32 %v4359_v35, 0.0 }
 0x1fa   : > { %v2312_v52 = vpop.f32.mrb[21].mxu1  ;;  %v4394_v15 = vmax.f32 %v4362_v23, 0.0  ;;  %v5503_v28 = vadd.f32 %v5471_v3, %v5335_v11  ;;  %v3925_v49 = vpop.f32.mrb[17].mxu0 }
 0x1fb   : > { %v5340_v31 = vpop.f32.mrb[22].mxu1  ;;  %v4392_v58 = vmax.f32 %v4360_v39, 0.0  ;;  %v5504_v21 = vadd.f32 %v3925_v49, %v2296_v19  ;;  %v5472_v45 = vpop.f32.mrb[18].mxu0 }
 0x1fc   : > { %v2315_v25 = vpop.f32.mrb[23].mxu1  ;;  %v4967_v16 = vpack.c.bf16 %v4394_v15, %v4393_v17  ;;  %v4141_v1 = vmul.f32 %v5503_v28, %v6781_v4  ;;  %v5505_v0 = vadd.f32 %v5472_v45, %v5336_v22  ;;  %v3928_v27 = vpop.f32.mrb[19].mxu0 }
 0x1fd   : > { %v4962_v43 = vpack.c.bf16 %v4392_v58, %v4391_v55  ;;  %v4139_v13 = vmul.f32 %v5504_v21, %v6781_v4  ;;  %v5506_v40 = vadd.f32 %v3928_v27, %v2299_v47  ;;  %v4320_v6 = vpop.permute.xlu0 %4319 }
 0x1fe   : > { %5017 = vst [vmem:[%s6797_s13 + $0x38] sm:$0xff] %v4967_v16   ;;  %v4365_v30 = vmul.f32 %v6810_v20, %v4141_v1  ;;  %v4142_v9 = vmul.f32 %v5505_v0, %v6781_v4 }
 0x1ff   : > { %5016 = vst [vmem:[%s6797_s13 + $0x30] sm:$0xff] %v4962_v43   ;;  %v4363_v18 = vmul.f32 %v6799_v7, %v4139_v13  ;;  %v4140_v36 = vmul.f32 %v5506_v40, %v6781_v4  ;;  %v4335_v40 = vpop.permute.xlu1 %4334 }
 0x200   : > { %v4366_v29 = vmul.f32 %v6807_v59, %v4142_v9  ;;  %v4397_v19 = vmax.f32 %v4365_v30, 0.0 }
 0x201   : > { %v5343_v12 = vpop.f32.mrb[24].mxu1  ;;  %v4364_v11 = vmul.f32 %v6792_v37, %v4140_v36  ;;  %v5475_v56 = vpop.f32.mrb[20].mxu0  ;;  %v4395_v2 = vmax.f32 %v4363_v18, 0.0 }
 0x202   : > { %v2328_v5 = vpop.f32.mrb[25].mxu1  ;;  %v4398_v32 = vmax.f32 %v4366_v29, 0.0  ;;  %v5507_v20 = vadd.f32 %v5475_v56, %v5339_v10  ;;  %v3941_v63 = vpop.f32.mrb[21].mxu0 }
 0x203   : > { %v5344_v57 = vpop.f32.mrb[26].mxu1  ;;  %v4396_v22 = vmax.f32 %v4364_v11, 0.0  ;;  %v5508_v7 = vadd.f32 %v3941_v63, %v2312_v52  ;;  %v5476_v51 = vpop.f32.mrb[22].mxu0 }
 0x204   : > { %v2331_v53 = vpop.f32.mrb[27].mxu1  ;;  %v4977_v46 = vpack.c.bf16 %v4398_v32, %v4397_v19  ;;  %v4145_v59 = vmul.f32 %v5507_v20, %v6781_v4  ;;  %v5509_v34 = vadd.f32 %v5476_v51, %v5340_v31  ;;  %v3944_v47 = vpop.f32.mrb[23].mxu0 }
 0x205   : > { %v4972_v37 = vpack.c.bf16 %v4396_v22, %v4395_v2  ;;  %v4143_v26 = vmul.f32 %v5508_v7, %v6781_v4  ;;  %v5510_v61 = vadd.f32 %v3944_v47, %v2315_v25  ;;  %v4330_v0 = vpop.permute.xlu0 %4329 }
 0x206   : > { %5019 = vst [vmem:[%s6797_s13 + $0x48] sm:$0xff] %v4977_v46   ;;  %v4369_v60 = vmul.f32 %v4300_v42, %v4145_v59  ;;  %v4146_v44 = vmul.f32 %v5509_v34, %v6781_v4 }
 0x207   : > { %5018 = vst [vmem:[%s6797_s13 + $0x40] sm:$0xff] %v4972_v37   ;;  %v4367_v50 = vmul.f32 %v6826_v8, %v4143_v26  ;;  %v4144_v33 = vmul.f32 %v5510_v61, %v6781_v4 }
 0x208   : > { %v4370_v48 = vmul.f32 %v6839_v62, %v4146_v44  ;;  %v4401_v39 = vmax.f32 %v4369_v60, 0.0 }
 0x209   : > { %v5347_v35 = vpop.f32.mrb[28].mxu1  ;;  %v4368_v14 = vmul.f32 %v6821_v41, %v4144_v33  ;;  %v5479_v23 = vpop.f32.mrb[24].mxu0  ;;  %v4399_v15 = vmax.f32 %v4367_v50, 0.0 }
 0x20a   : > { %v2344_v10 = vpop.f32.mrb[29].mxu1  ;;  %v4402_v3 = vmax.f32 %v4370_v48, 0.0  ;;  %v5511_v42 = vadd.f32 %v5479_v23, %v5343_v12  ;;  %v3957_v52 = vpop.f32.mrb[25].mxu0 }
 0x20b   : > { %v5348_v17 = vpop.f32.mrb[30].mxu1  ;;  %v4400_v28 = vmax.f32 %v4368_v14, 0.0  ;;  %v5512_v8 = vadd.f32 %v3957_v52, %v2328_v5  ;;  %v5480_v49 = vpop.f32.mrb[26].mxu0 }
 0x20c   : > { %v2347_v31 = vpop.f32.mrb[31].mxu1  ;;  %v4987_v55 = vpack.c.bf16 %v4402_v3, %v4401_v39  ;;  %v4149_v62 = vmul.f32 %v5511_v42, %v6781_v4  ;;  %v5513_v58 = vadd.f32 %v5480_v49, %v5344_v57  ;;  %v3960_v21 = vpop.f32.mrb[27].mxu0 }
 0x20d   : > { %v4982_v41 = vpack.c.bf16 %v4400_v28, %v4399_v15  ;;  %v4147_v45 = vmul.f32 %v5512_v8, %v6781_v4  ;;  %v5514_v25 = vadd.f32 %v3960_v21, %v2331_v53  ;;  %v4340_v57 = vpop.permute.xlu0 %4339  ;;  %v4345_v53 = vpop.permute.xlu1 %4344 }
 0x20e   : > { %5021 = vst [vmem:[%s6797_s13 + $0x58] sm:$0xff] %v4987_v55   ;;  %v4373_v16 = vmul.f32 %v4320_v6, %v4149_v62  ;;  %v4150_v1 = vmul.f32 %v5513_v58, %v6781_v4 }
 0x20f   : > { %5020 = vst [vmem:[%s6797_s13 + $0x50] sm:$0xff] %v4982_v41   ;;  %v4371_v27 = vmul.f32 %v4310_v54, %v4147_v45  ;;  %v4148_v43 = vmul.f32 %v5514_v25, %v6781_v4 }
 0x210   : > { %v4374_v13 = vmul.f32 %v4325_v24, %v4150_v1  ;;  %v4405_v18 = vmax.f32 %v4373_v16, 0.0 }
 0x211   : > { %v4372_v30 = vmul.f32 %v6851_v38, %v4148_v43  ;;  %v5483_v9 = vpop.f32.mrb[28].mxu0  ;;  %v4403_v11 = vmax.f32 %v4371_v27, 0.0 }
 0x212   : > { %v4406_v36 = vmax.f32 %v4374_v13, 0.0  ;;  %v5515_v29 = vadd.f32 %v5483_v9, %v5347_v35  ;;  %v3973_v12 = vpop.f32.mrb[29].mxu0 }
 0x213   : > { %v4404_v56 = vmax.f32 %v4372_v30, 0.0  ;;  %v5516_v5 = vadd.f32 %v3973_v12, %v2344_v10  ;;  %v5484_v19 = vpop.f32.mrb[30].mxu0 }
 0x214   : > { %v4997_v32 = vpack.c.bf16 %v4406_v36, %v4405_v18  ;;  %v4153_v54 = vmul.f32 %v5515_v29, %v6781_v4  ;;  %v5517_v20 = vadd.f32 %v5484_v19, %v5348_v17  ;;  %v3976_v63 = vpop.f32.mrb[31].mxu0 }
 0x215   : > { %v4992_v2 = vpack.c.bf16 %v4404_v56, %v4403_v11  ;;  %v4151_v38 = vmul.f32 %v5516_v5, %v6781_v4  ;;  %v5518_v22 = vadd.f32 %v3976_v63, %v2347_v31 }
 0x216   : > { %5023 = vst [vmem:[%s6797_s13 + $0x68] sm:$0xff] %v4997_v32   ;;  %v4377_v7 = vmul.f32 %v4340_v57, %v4153_v54  ;;  %v4154_v51 = vmul.f32 %v5517_v20, %v6781_v4 }
 0x217   : > { %5022 = vst [vmem:[%s6797_s13 + $0x60] sm:$0xff] %v4992_v2   ;;  %v4375_v46 = vmul.f32 %v4330_v0, %v4151_v38  ;;  %v4152_v59 = vmul.f32 %v5518_v22, %v6781_v4 }
 0x218   : > { %v4378_v34 = vmul.f32 %v4345_v53, %v4154_v51  ;;  %v4409_v37 = vmax.f32 %v4377_v7, 0.0 }
 0x219   : > { %v4376_v47 = vmul.f32 %v4335_v40, %v4152_v59  ;;  %v4407_v61 = vmax.f32 %v4375_v46, 0.0 }
 0x21a   : > { %v4410_v26 = vmax.f32 %v4378_v34, 0.0 }
 0x21b   : > { %v4408_v60 = vmax.f32 %v4376_v47, 0.0 }
 0x21c   : > { %v5007_v44 = vpack.c.bf16 %v4410_v26, %v4409_v37 }
 0x21d   : > { %v5002_v24 = vpack.c.bf16 %v4408_v60, %v4407_v61 }
 0x21e   : > { %5025 = vst [vmem:[%s6797_s13 + $0x78] sm:$0xff] %v5007_v44  }
 0x21f   : > { %5024 = vst [vmem:[%s6797_s13 + $0x70] sm:$0xff] %v5002_v24  }
 0x220 PF: > { %s15_s18 = sadd.s32 1, %s5790_s18  }
 0x221   : > { %p12_p6 = scmp.ge.s32.totalorder %s15_s18, 5  }
 0x223   :  { %14 = sbr.rel (!%p12_p6) target bundleno = 1 (0x1), region = 84 }

</bundles_post_ra>
